<compile_context>
chip_gen: v6e
topology: v6e:2x2x1
jax: 0.10.0
libtpu: 0.0.40
codegen_flags: <defaults>
</compile_context>

<pallas_src>
import jax
import jax.numpy as jnp
from jax import lax
from jax.experimental import pallas as pl
from jax.experimental.pallas import tpu as pltpu

EPS = 1e-5     # PyTorch GroupNorm default eps
LPAD = 128     # lane padding on each side of the flattened image (keeps stores lane-aligned)


def residual_block_forward(x_nchw, params):
    N, Cin, H, W = x_nchw.shape
    Cout = params["w1"].shape[-1]
    assert Cin == Cout, "stride=1 residual requires in_planes == planes"
    assert Cout % 8 == 0, "GroupNorm with num_groups = planes // 8 requires planes % 8 == 0"
    G = Cout // 8                      # num_groups = planes // 8
    Cpg = Cout // G                    # channels per group (= 8)
    HW = H * W

    # NCHW -> (N, C, H*W): free reshape (contiguous last-dim merge), no transpose needed.
    x2 = x_nchw.reshape(N, Cin, HW).astype(jnp.float32)

    # Conv weights HWIO (3,3,ci,co) -> (co, 9*ci) bf16, tap-major columns (tap = ky*3 + kx).
    def prep_w(w):
        ci, co = w.shape[2], w.shape[3]
        return jnp.transpose(w, (3, 0, 1, 2)).reshape(co, 9 * ci).astype(jnp.bfloat16)

    def colvec(v):
        return v.reshape(-1, 1).astype(jnp.float32)     # (Cout, 1) channel-major column

    w1m, w2m = prep_w(params["w1"]), prep_w(params["w2"])
    b1, g1, be1 = colvec(params["b1"]), colvec(params["gamma1"]), colvec(params["beta1"])
    b2, g2, be2 = colvec(params["b2"]), colvec(params["gamma2"]), colvec(params["beta2"])

    inv_n = 1.0 / (Cpg * HW)           # GroupNorm normalizer (channels-per-group * spatial)
    fHW = float(HW)

    def kernel(x_ref, w1_ref, b1_ref, g1_ref, be1_ref,
               w2_ref, b2_ref, g2_ref, be2_ref, out_ref, pad_ref):
        # Column masks for the +/-1 lane shifts (row overflow falls into the zero border instead).
        pos = lax.broadcasted_iota(jnp.int32, (1, HW), 1)
        col = pos % W
        mask_l = col >= 1          # valid positions for dx = -1
        mask_r = col < (W - 1)     # valid positions for dx = +1
        zero_bf = jnp.zeros((), jnp.bfloat16)

        def conv_gn_relu(w_ref_, b_ref_, gamma_ref_, beta_ref_):
            # im2col: 9 shifted bf16 windows of the zero-padded flat image -> (9*C, HW).
            taps = []
            for dy in (-1, 0, 1):
                for dx in (-1, 0, 1):
                    off = dy * W + dx
                    raw = pad_ref[:, LPAD + off:LPAD + off + HW]        # (C, HW) bf16
                    if dx == -1:
                        raw = jnp.where(mask_l, raw, zero_bf)
                    elif dx == 1:
                        raw = jnp.where(mask_r, raw, zero_bf)
                    taps.append(raw)
            patch = jnp.concatenate(taps, axis=0)                       # (9*C, HW) bf16

            # Single MXU matmul (bf16 operands, f32 accumulation), channel-major output.
            a = jnp.dot(w_ref_[...], patch,
                        preferred_element_type=jnp.float32)             # (Cout, HW) f32, no bias

            # Per-channel spatial statistics (lane reduces, f32).
            s1 = jnp.sum(a, axis=1, keepdims=True)                      # (Cout, 1)
            s2 = jnp.sum(a * a, axis=1, keepdims=True)                  # (Cout, 1)

            b_col, g_col, be_col = b_ref_[...], gamma_ref_[...], beta_ref_[...]
            scale_pieces, shift_pieces = [], []
            for g in range(G):
                sl = slice(g * Cpg, (g + 1) * Cpg)
                bg, s1g, s2g = b_col[sl], s1[sl], s2[sl]
                # Stats of (a + bias) derived analytically: only tiny (Cpg,1) columns involved.
                gs1 = jnp.sum(s1g + fHW * bg, axis=0, keepdims=True)                    # (1,1)
                gs2 = jnp.sum(s2g + 2.0 * bg * s1g + fHW * bg * bg, axis=0, keepdims=True)
                mean = gs1 * inv_n
                var = jnp.maximum(gs2 * inv_n - mean * mean, 0.0)
                inv_std = lax.rsqrt(var + EPS)
                scale = g_col[sl] * inv_std                              # (Cpg, 1)
                shift = (bg - mean) * scale + be_col[sl]                 # bias folded in here
                scale_pieces.append(scale)
                shift_pieces.append(shift)
            scale = scale_pieces[0] if G == 1 else jnp.concatenate(scale_pieces, axis=0)
            shift = shift_pieces[0] if G == 1 else jnp.concatenate(shift_pieces, axis=0)

            # conv-bias + GroupNorm affine collapsed into one per-element FMA, then ReLU.
            return jnp.maximum(a * scale + shift, 0.0)                   # (Cout, HW) f32

        # Re-zero only the halo borders (center is overwritten; borders never written elsewhere).
        pad_ref[:, :LPAD] = jnp.zeros((Cin, LPAD), jnp.bfloat16)
        pad_ref[:, LPAD + HW:] = jnp.zeros((Cin, LPAD), jnp.bfloat16)

        pad_ref[:, LPAD:LPAD + HW] = x_ref[0].astype(jnp.bfloat16)       # lane-aligned store
        y1 = conv_gn_relu(w1_ref, b1_ref, g1_ref, be1_ref)

        pad_ref[:, LPAD:LPAD + HW] = y1.astype(jnp.bfloat16)             # block-1 stays in VMEM
        y2 = conv_gn_relu(w2_ref, b2_ref, g2_ref, be2_ref)

        out_ref[0] = jnp.maximum(x_ref[0] + y2, 0.0).astype(out_ref.dtype)

    par = pl.BlockSpec((Cout, 1), lambda n: (0, 0))
    out = pl.pallas_call(
        kernel,
        out_shape=jax.ShapeDtypeStruct((N, Cout, HW), jnp.float32),
        grid=(N,),
        in_specs=[
            pl.BlockSpec((1, Cin, HW), lambda n: (n, 0, 0)),
            pl.BlockSpec((Cout, 9 * Cin), lambda n: (0, 0)), par, par, par,
            pl.BlockSpec((Cout, 9 * Cout), lambda n: (0, 0)), par, par, par,
        ],
        out_specs=pl.BlockSpec((1, Cout, HW), lambda n: (n, 0, 0)),
        scratch_shapes=[pltpu.VMEM((Cout, 2 * LPAD + HW), jnp.bfloat16)],
        compiler_params=pltpu.CompilerParams(dimension_semantics=("parallel",)),
    )(x2, w1m, b1, g1, be1, w2m, b2, g2, be2)

    return out.reshape(N, Cout, H, W)               # free reshape back to NCHW


def reference_forward(x_nchw, params):
    """Pure-JAX reference mirroring the PyTorch module (correctness check)."""
    x = jnp.transpose(x_nchw, (0, 2, 3, 1)).astype(jnp.float32)
    planes = params["w1"].shape[-1]
    G = planes // 8

    def conv(inp, w, b):
        out = lax.conv_general_dilated(
            inp, w, (1, 1), "SAME",
            dimension_numbers=("NHWC", "HWIO", "NHWC"),
            precision=lax.Precision.HIGHEST)
        return out + b

    def gn(inp, gamma, beta):
        Nb, Hh, Ww, C = inp.shape
        r = inp.reshape(Nb, Hh, Ww, G, C // G)
        m = r.mean(axis=(1, 2, 4), keepdims=True)
        v = ((r - m) ** 2).mean(axis=(1, 2, 4), keepdims=True)
        r = (r - m) / jnp.sqrt(v + EPS)
        return r.reshape(Nb, Hh, Ww, C) * gamma + beta

    y = jax.nn.relu(gn(conv(x, params["w1"], params["b1"]),
                       params["gamma1"], params["beta1"]))
    y = jax.nn.relu(gn(conv(y, params["w2"], params["b2"]),
                       params["gamma2"], params["beta2"]))
    out = jax.nn.relu(x + y)
    return jnp.transpose(out, (0, 3, 1, 2))


if __name__ == "__main__":
    N, C, H, W = 2, 16, 16, 16            # in_planes = planes = 16, stride = 1
    planes = 16

    key = jax.random.PRNGKey(0)
    ks = jax.random.split(key, 9)
    params = {
        "w1": 0.1 * jax.random.normal(ks[0], (3, 3, C, planes), jnp.float32),
        "b1": 0.05 * jax.random.normal(ks[1], (planes,), jnp.float32),
        "gamma1": 1.0 + 0.1 * jax.random.normal(ks[2], (planes,), jnp.float32),
        "beta1": 0.1 * jax.random.normal(ks[3], (planes,), jnp.float32),
        "w2": 0.1 * jax.random.normal(ks[4], (3, 3, planes, planes), jnp.float32),
        "b2": 0.05 * jax.random.normal(ks[5], (planes,), jnp.float32),
        "gamma2": 1.0 + 0.1 * jax.random.normal(ks[6], (planes,), jnp.float32),
        "beta2": 0.1 * jax.random.normal(ks[7], (planes,), jnp.float32),
    }
    x = jax.random.normal(ks[8], (N, C, H, W), jnp.float32)

    out = residual_block_forward(x, params)
    out = jax.block_until_ready(out)

    ref = reference_forward(x, params)
    max_err = float(jnp.max(jnp.abs(out - ref)))
    # bf16 MXU operands (GN statistics kept in f32) -> slightly looser tolerance than pure f32.
    assert jnp.allclose(out, ref, atol=5e-2, rtol=5e-2), f"mismatch, max_err={max_err}"
    print("KERNEL_OK")
</pallas_src>

<mosaic_0001>
module attributes {stable_mosaic.version = 11 : i64} {
  func.func @kernel(%arg0: i32, %arg1: memref<1x16x256xf32, #tpu.memory_space<vmem>>, %arg2: memref<16x144xbf16, #tpu.memory_space<vmem>>, %arg3: memref<16x1xf32, #tpu.memory_space<vmem>>, %arg4: memref<16x1xf32, #tpu.memory_space<vmem>>, %arg5: memref<16x1xf32, #tpu.memory_space<vmem>>, %arg6: memref<16x144xbf16, #tpu.memory_space<vmem>>, %arg7: memref<16x1xf32, #tpu.memory_space<vmem>>, %arg8: memref<16x1xf32, #tpu.memory_space<vmem>>, %arg9: memref<16x1xf32, #tpu.memory_space<vmem>>, %arg10: memref<1x16x256xf32, #tpu.memory_space<vmem>>, %arg11: memref<16x512xbf16, #tpu.memory_space<vmem>>) attributes {dimension_semantics = [#tpu.dimension_semantics<parallel>], iteration_bounds = array<i64: 2>, scalar_prefetch = 0 : i64, scratch_operands = 1 : i64, tpu.core_type = #tpu.core_type<tc>, window_params = [{transform_indices = @transform_0, window_bounds = array<i64: 1, 16, 256>}, {pipeline_mode = #tpu.pipeline_mode<synchronous>, transform_indices = @transform_1, window_bounds = array<i64: 16, 144>}, {pipeline_mode = #tpu.pipeline_mode<synchronous>, transform_indices = @transform_2, window_bounds = array<i64: 16, 1>}, {pipeline_mode = #tpu.pipeline_mode<synchronous>, transform_indices = @transform_3, window_bounds = array<i64: 16, 1>}, {pipeline_mode = #tpu.pipeline_mode<synchronous>, transform_indices = @transform_4, window_bounds = array<i64: 16, 1>}, {pipeline_mode = #tpu.pipeline_mode<synchronous>, transform_indices = @transform_5, window_bounds = array<i64: 16, 144>}, {pipeline_mode = #tpu.pipeline_mode<synchronous>, transform_indices = @transform_6, window_bounds = array<i64: 16, 1>}, {pipeline_mode = #tpu.pipeline_mode<synchronous>, transform_indices = @transform_7, window_bounds = array<i64: 16, 1>}, {pipeline_mode = #tpu.pipeline_mode<synchronous>, transform_indices = @transform_8, window_bounds = array<i64: 16, 1>}, {transform_indices = @transform_9, window_bounds = array<i64: 1, 16, 256>}]} {
    %0 = tpu.iota {dimensions = array<i32: 1>} : vector<1x256xi32>
    %c16_i32 = arith.constant 16 : i32
    %c0_i32 = arith.constant 0 : i32
    %1 = arith.cmpi eq, %c16_i32, %c0_i32 : i32
    %c1_i32 = arith.constant 1 : i32
    %2 = arith.select %1, %c1_i32, %c16_i32 : i32
    %3 = vector.broadcast %2 : i32 to vector<1x256xi32>
    %4 = arith.remsi %0, %3 : vector<1x256xi32>
    %c0_i32_0 = arith.constant 0 : i32
    %5 = vector.broadcast %c0_i32_0 : i32 to vector<1x256xi32>
    %6 = arith.cmpi ne, %4, %5 : vector<1x256xi32>
    %c0_i32_1 = arith.constant 0 : i32
    %7 = vector.broadcast %c0_i32_1 : i32 to vector<1x256xi32>
    %8 = arith.cmpi slt, %4, %7 : vector<1x256xi32>
    %c0_i32_2 = arith.constant 0 : i32
    %9 = arith.cmpi slt, %2, %c0_i32_2 : i32
    %10 = vector.broadcast %9 : i1 to vector<1x256xi1>
    %11 = vector.broadcast %10 : vector<1x256xi1> to vector<1x256xi1>
    %12 = arith.xori %8, %11 : vector<1x256xi1>
    %13 = arith.andi %12, %6 : vector<1x256xi1>
    %14 = vector.broadcast %2 : i32 to vector<1x256xi32>
    %15 = arith.addi %4, %14 : vector<1x256xi32>
    %16 = arith.select %13, %15, %4 : vector<1x256xi1>, vector<1x256xi32>
    %c1_i32_3 = arith.constant 1 : i32
    %17 = vector.broadcast %c1_i32_3 : i32 to vector<1x256xi32>
    %18 = arith.cmpi sge, %16, %17 : vector<1x256xi32>
    %c15_i32 = arith.constant 15 : i32
    %19 = vector.broadcast %c15_i32 : i32 to vector<1x256xi32>
    %20 = arith.cmpi slt, %16, %19 : vector<1x256xi32>
    %cst = arith.constant 0.000000e+00 : bf16
    %21 = vector.broadcast %cst : bf16 to vector<16x128xbf16>
    %c0 = arith.constant 0 : index
    %c0_4 = arith.constant 0 : index
    %22 = vector.load %arg11[%c0, %c0_4] : memref<16x512xbf16, #tpu.memory_space<vmem>>, vector<16x128xbf16>
    tpu.vector_store %arg11[%c0, %c0_4], %21 {strides = array<i32>} : memref<16x512xbf16, #tpu.memory_space<vmem>>, vector<16x128xbf16>,
    %cst_5 = arith.constant 0.000000e+00 : bf16
    %23 = vector.broadcast %cst_5 : bf16 to vector<16x128xbf16>
    %c0_6 = arith.constant 0 : index
    %c384 = arith.constant 384 : index
    %24 = vector.load %arg11[%c0_6, %c384] : memref<16x512xbf16, #tpu.memory_space<vmem>>, vector<16x128xbf16>
    tpu.vector_store %arg11[%c0_6, %c384], %23 {strides = array<i32>} : memref<16x512xbf16, #tpu.memory_space<vmem>>, vector<16x128xbf16>,
    %c0_7 = arith.constant 0 : index
    %c0_8 = arith.constant 0 : index
    %c0_9 = arith.constant 0 : index
    %25 = vector.load %arg1[%c0_7, %c0_8, %c0_9] : memref<1x16x256xf32, #tpu.memory_space<vmem>>, vector<1x16x256xf32>
    %26 = vector.shape_cast %25 : vector<1x16x256xf32> to vector<16x256xf32>
    %27 = arith.truncf %26 : vector<16x256xf32> to vector<16x256xbf16>
    %c0_10 = arith.constant 0 : index
    %c128 = arith.constant 128 : index
    %28 = vector.load %arg11[%c0_10, %c128] : memref<16x512xbf16, #tpu.memory_space<vmem>>, vector<16x256xbf16>
    tpu.vector_store %arg11[%c0_10, %c128], %27 {strides = array<i32>} : memref<16x512xbf16, #tpu.memory_space<vmem>>, vector<16x256xbf16>,
    %c0_11 = arith.constant 0 : index
    %c111 = arith.constant 111 : index
    %29 = vector.load %arg11[%c0_11, %c111] : memref<16x512xbf16, #tpu.memory_space<vmem>>, vector<16x256xbf16>
    %cst_12 = arith.constant 0.000000e+00 : bf16
    %30 = vector.shape_cast %18 : vector<1x256xi1> to vector<1x256xi1>
    %31 = vector.broadcast %30 : vector<1x256xi1> to vector<16x256xi1>
    %32 = vector.broadcast %cst_12 : bf16 to vector<16x256xbf16>
    %33 = arith.select %31, %29, %32 : vector<16x256xi1>, vector<16x256xbf16>
    %c0_13 = arith.constant 0 : index
    %c112 = arith.constant 112 : index
    %34 = vector.load %arg11[%c0_13, %c112] : memref<16x512xbf16, #tpu.memory_space<vmem>>, vector<16x256xbf16>
    %c0_14 = arith.constant 0 : index
    %c113 = arith.constant 113 : index
    %35 = vector.load %arg11[%c0_14, %c113] : memref<16x512xbf16, #tpu.memory_space<vmem>>, vector<16x256xbf16>
    %cst_15 = arith.constant 0.000000e+00 : bf16
    %36 = vector.shape_cast %20 : vector<1x256xi1> to vector<1x256xi1>
    %37 = vector.broadcast %36 : vector<1x256xi1> to vector<16x256xi1>
    %38 = vector.broadcast %cst_15 : bf16 to vector<16x256xbf16>
    %39 = arith.select %37, %35, %38 : vector<16x256xi1>, vector<16x256xbf16>
    %c0_16 = arith.constant 0 : index
    %c127 = arith.constant 127 : index
    %40 = vector.load %arg11[%c0_16, %c127] : memref<16x512xbf16, #tpu.memory_space<vmem>>, vector<16x256xbf16>
    %cst_17 = arith.constant 0.000000e+00 : bf16
    %41 = vector.shape_cast %18 : vector<1x256xi1> to vector<1x256xi1>
    %42 = vector.broadcast %41 : vector<1x256xi1> to vector<16x256xi1>
    %43 = vector.broadcast %cst_17 : bf16 to vector<16x256xbf16>
    %44 = arith.select %42, %40, %43 : vector<16x256xi1>, vector<16x256xbf16>
    %c0_18 = arith.constant 0 : index
    %c128_19 = arith.constant 128 : index
    %45 = vector.load %arg11[%c0_18, %c128_19] : memref<16x512xbf16, #tpu.memory_space<vmem>>, vector<16x256xbf16>
    %c0_20 = arith.constant 0 : index
    %c129 = arith.constant 129 : index
    %46 = vector.load %arg11[%c0_20, %c129] : memref<16x512xbf16, #tpu.memory_space<vmem>>, vector<16x256xbf16>
    %cst_21 = arith.constant 0.000000e+00 : bf16
    %47 = vector.shape_cast %20 : vector<1x256xi1> to vector<1x256xi1>
    %48 = vector.broadcast %47 : vector<1x256xi1> to vector<16x256xi1>
    %49 = vector.broadcast %cst_21 : bf16 to vector<16x256xbf16>
    %50 = arith.select %48, %46, %49 : vector<16x256xi1>, vector<16x256xbf16>
    %c0_22 = arith.constant 0 : index
    %c143 = arith.constant 143 : index
    %51 = vector.load %arg11[%c0_22, %c143] : memref<16x512xbf16, #tpu.memory_space<vmem>>, vector<16x256xbf16>
    %cst_23 = arith.constant 0.000000e+00 : bf16
    %52 = vector.shape_cast %18 : vector<1x256xi1> to vector<1x256xi1>
    %53 = vector.broadcast %52 : vector<1x256xi1> to vector<16x256xi1>
    %54 = vector.broadcast %cst_23 : bf16 to vector<16x256xbf16>
    %55 = arith.select %53, %51, %54 : vector<16x256xi1>, vector<16x256xbf16>
    %c0_24 = arith.constant 0 : index
    %c144 = arith.constant 144 : index
    %56 = vector.load %arg11[%c0_24, %c144] : memref<16x512xbf16, #tpu.memory_space<vmem>>, vector<16x256xbf16>
    %c0_25 = arith.constant 0 : index
    %c145 = arith.constant 145 : index
    %57 = vector.load %arg11[%c0_25, %c145] : memref<16x512xbf16, #tpu.memory_space<vmem>>, vector<16x256xbf16>
    %cst_26 = arith.constant 0.000000e+00 : bf16
    %58 = vector.shape_cast %20 : vector<1x256xi1> to vector<1x256xi1>
    %59 = vector.broadcast %58 : vector<1x256xi1> to vector<16x256xi1>
    %60 = vector.broadcast %cst_26 : bf16 to vector<16x256xbf16>
    %61 = arith.select %59, %57, %60 : vector<16x256xi1>, vector<16x256xbf16>
    %62 = tpu.concatenate %33, %34, %39, %44, %45, %50, %55, %56, %61 in 0 : vector<16x256xbf16>, vector<16x256xbf16>, vector<16x256xbf16>, vector<16x256xbf16>, vector<16x256xbf16>, vector<16x256xbf16>, vector<16x256xbf16>, vector<16x256xbf16>, vector<16x256xbf16> -> vector<144x256xbf16>
    %c0_27 = arith.constant 0 : index
    %c0_28 = arith.constant 0 : index
    %63 = vector.load %arg2[%c0_27, %c0_28] : memref<16x144xbf16, #tpu.memory_space<vmem>>, vector<16x144xbf16>
    %cst_29 = arith.constant dense<0.000000e+00> : vector<16x256xf32>
    %64 = tpu.matmul %63, %62, %cst_29 {dimension_numbers = #tpu.dot_dimension_numbers<[1], [0], [0], [1], [0, 0, 1, 1], [], []>} : vector<16x144xbf16>, vector<144x256xbf16>, vector<16x256xf32> -> vector<16x256xf32>
    %cst_30 = arith.constant dense<0.000000e+00> : vector<16xf32>
    %65 = vector.multi_reduction <add>, %64, %cst_30 [1] : vector<16x256xf32> to vector<16xf32>
    %66 = vector.shape_cast %65 : vector<16xf32> to vector<16x1xf32>
    %67 = arith.mulf %64, %64 : vector<16x256xf32>
    %cst_31 = arith.constant dense<0.000000e+00> : vector<16xf32>
    %68 = vector.multi_reduction <add>, %67, %cst_31 [1] : vector<16x256xf32> to vector<16xf32>
    %69 = vector.shape_cast %68 : vector<16xf32> to vector<16x1xf32>
    %c0_32 = arith.constant 0 : index
    %c0_33 = arith.constant 0 : index
    %70 = vector.load %arg3[%c0_32, %c0_33] : memref<16x1xf32, #tpu.memory_space<vmem>>, vector<16x1xf32>
    %c0_34 = arith.constant 0 : index
    %c0_35 = arith.constant 0 : index
    %71 = vector.load %arg4[%c0_34, %c0_35] : memref<16x1xf32, #tpu.memory_space<vmem>>, vector<16x1xf32>
    %c0_36 = arith.constant 0 : index
    %c0_37 = arith.constant 0 : index
    %72 = vector.load %arg5[%c0_36, %c0_37] : memref<16x1xf32, #tpu.memory_space<vmem>>, vector<16x1xf32>
    %73 = vector.extract_strided_slice %70 {offsets = [0, 0], sizes = [8, 1], strides = [1, 1]} : vector<16x1xf32> to vector<8x1xf32>
    %74 = vector.extract_strided_slice %66 {offsets = [0, 0], sizes = [8, 1], strides = [1, 1]} : vector<16x1xf32> to vector<8x1xf32>
    %75 = vector.extract_strided_slice %69 {offsets = [0, 0], sizes = [8, 1], strides = [1, 1]} : vector<16x1xf32> to vector<8x1xf32>
    %cst_38 = arith.constant 2.560000e+02 : f32
    %76 = vector.broadcast %cst_38 : f32 to vector<8x1xf32>
    %77 = arith.mulf %76, %73 : vector<8x1xf32>
    %78 = arith.addf %74, %77 : vector<8x1xf32>
    %cst_39 = arith.constant dense<0.000000e+00> : vector<1xf32>
    %79 = vector.multi_reduction <add>, %78, %cst_39 [0] : vector<8x1xf32> to vector<1xf32>
    %80 = vector.shape_cast %79 : vector<1xf32> to vector<1x1xf32>
    %cst_40 = arith.constant 2.000000e+00 : f32
    %81 = vector.broadcast %cst_40 : f32 to vector<8x1xf32>
    %82 = arith.mulf %81, %73 : vector<8x1xf32>
    %83 = arith.mulf %82, %74 : vector<8x1xf32>
    %84 = arith.addf %75, %83 : vector<8x1xf32>
    %cst_41 = arith.constant 2.560000e+02 : f32
    %85 = vector.broadcast %cst_41 : f32 to vector<8x1xf32>
    %86 = arith.mulf %85, %73 : vector<8x1xf32>
    %87 = arith.mulf %86, %73 : vector<8x1xf32>
    %88 = arith.addf %84, %87 : vector<8x1xf32>
    %cst_42 = arith.constant dense<0.000000e+00> : vector<1xf32>
    %89 = vector.multi_reduction <add>, %88, %cst_42 [0] : vector<8x1xf32> to vector<1xf32>
    %90 = vector.shape_cast %89 : vector<1xf32> to vector<1x1xf32>
    %cst_43 = arith.constant 4.8828125E-4 : f32
    %91 = vector.broadcast %cst_43 : f32 to vector<1x1xf32>
    %92 = arith.mulf %80, %91 : vector<1x1xf32>
    %cst_44 = arith.constant 4.8828125E-4 : f32
    %93 = vector.broadcast %cst_44 : f32 to vector<1x1xf32>
    %94 = arith.mulf %90, %93 : vector<1x1xf32>
    %95 = arith.mulf %92, %92 : vector<1x1xf32>
    %96 = arith.subf %94, %95 : vector<1x1xf32>
    %cst_45 = arith.constant 0.000000e+00 : f32
    %97 = vector.broadcast %cst_45 : f32 to vector<1x1xf32>
    %98 = arith.maximumf %96, %97 : vector<1x1xf32>
    %cst_46 = arith.constant 9.99999974E-6 : f32
    %99 = vector.broadcast %cst_46 : f32 to vector<1x1xf32>
    %100 = arith.addf %98, %99 : vector<1x1xf32>
    %101 = math.rsqrt %100 : vector<1x1xf32>
    %102 = vector.extract_strided_slice %71 {offsets = [0, 0], sizes = [8, 1], strides = [1, 1]} : vector<16x1xf32> to vector<8x1xf32>
    %103 = vector.broadcast %101 : vector<1x1xf32> to vector<8x1xf32>
    %104 = arith.mulf %102, %103 : vector<8x1xf32>
    %105 = vector.broadcast %92 : vector<1x1xf32> to vector<8x1xf32>
    %106 = arith.subf %73, %105 : vector<8x1xf32>
    %107 = arith.mulf %106, %104 : vector<8x1xf32>
    %108 = vector.extract_strided_slice %72 {offsets = [0, 0], sizes = [8, 1], strides = [1, 1]} : vector<16x1xf32> to vector<8x1xf32>
    %109 = arith.addf %107, %108 : vector<8x1xf32>
    %110 = vector.extract_strided_slice %70 {offsets = [8, 0], sizes = [8, 1], strides = [1, 1]} : vector<16x1xf32> to vector<8x1xf32>
    %111 = vector.extract_strided_slice %66 {offsets = [8, 0], sizes = [8, 1], strides = [1, 1]} : vector<16x1xf32> to vector<8x1xf32>
    %112 = vector.extract_strided_slice %69 {offsets = [8, 0], sizes = [8, 1], strides = [1, 1]} : vector<16x1xf32> to vector<8x1xf32>
    %cst_47 = arith.constant 2.560000e+02 : f32
    %113 = vector.broadcast %cst_47 : f32 to vector<8x1xf32>
    %114 = arith.mulf %113, %110 : vector<8x1xf32>
    %115 = arith.addf %111, %114 : vector<8x1xf32>
    %cst_48 = arith.constant dense<0.000000e+00> : vector<1xf32>
    %116 = vector.multi_reduction <add>, %115, %cst_48 [0] : vector<8x1xf32> to vector<1xf32>
    %117 = vector.shape_cast %116 : vector<1xf32> to vector<1x1xf32>
    %cst_49 = arith.constant 2.000000e+00 : f32
    %118 = vector.broadcast %cst_49 : f32 to vector<8x1xf32>
    %119 = arith.mulf %118, %110 : vector<8x1xf32>
    %120 = arith.mulf %119, %111 : vector<8x1xf32>
    %121 = arith.addf %112, %120 : vector<8x1xf32>
    %cst_50 = arith.constant 2.560000e+02 : f32
    %122 = vector.broadcast %cst_50 : f32 to vector<8x1xf32>
    %123 = arith.mulf %122, %110 : vector<8x1xf32>
    %124 = arith.mulf %123, %110 : vector<8x1xf32>
    %125 = arith.addf %121, %124 : vector<8x1xf32>
    %cst_51 = arith.constant dense<0.000000e+00> : vector<1xf32>
    %126 = vector.multi_reduction <add>, %125, %cst_51 [0] : vector<8x1xf32> to vector<1xf32>
    %127 = vector.shape_cast %126 : vector<1xf32> to vector<1x1xf32>
    %cst_52 = arith.constant 4.8828125E-4 : f32
    %128 = vector.broadcast %cst_52 : f32 to vector<1x1xf32>
    %129 = arith.mulf %117, %128 : vector<1x1xf32>
    %cst_53 = arith.constant 4.8828125E-4 : f32
    %130 = vector.broadcast %cst_53 : f32 to vector<1x1xf32>
    %131 = arith.mulf %127, %130 : vector<1x1xf32>
    %132 = arith.mulf %129, %129 : vector<1x1xf32>
    %133 = arith.subf %131, %132 : vector<1x1xf32>
    %cst_54 = arith.constant 0.000000e+00 : f32
    %134 = vector.broadcast %cst_54 : f32 to vector<1x1xf32>
    %135 = arith.maximumf %133, %134 : vector<1x1xf32>
    %cst_55 = arith.constant 9.99999974E-6 : f32
    %136 = vector.broadcast %cst_55 : f32 to vector<1x1xf32>
    %137 = arith.addf %135, %136 : vector<1x1xf32>
    %138 = math.rsqrt %137 : vector<1x1xf32>
    %139 = vector.extract_strided_slice %71 {offsets = [8, 0], sizes = [8, 1], strides = [1, 1]} : vector<16x1xf32> to vector<8x1xf32>
    %140 = vector.broadcast %138 : vector<1x1xf32> to vector<8x1xf32>
    %141 = arith.mulf %139, %140 : vector<8x1xf32>
    %142 = vector.broadcast %129 : vector<1x1xf32> to vector<8x1xf32>
    %143 = arith.subf %110, %142 : vector<8x1xf32>
    %144 = arith.mulf %143, %141 : vector<8x1xf32>
    %145 = vector.extract_strided_slice %72 {offsets = [8, 0], sizes = [8, 1], strides = [1, 1]} : vector<16x1xf32> to vector<8x1xf32>
    %146 = arith.addf %144, %145 : vector<8x1xf32>
    %147 = tpu.concatenate %104, %141 in 0 : vector<8x1xf32>, vector<8x1xf32> -> vector<16x1xf32>
    %148 = tpu.concatenate %109, %146 in 0 : vector<8x1xf32>, vector<8x1xf32> -> vector<16x1xf32>
    %149 = vector.broadcast %147 : vector<16x1xf32> to vector<16x256xf32>
    %150 = arith.mulf %64, %149 : vector<16x256xf32>
    %151 = vector.broadcast %148 : vector<16x1xf32> to vector<16x256xf32>
    %152 = arith.addf %150, %151 : vector<16x256xf32>
    %cst_56 = arith.constant 0.000000e+00 : f32
    %153 = vector.broadcast %cst_56 : f32 to vector<16x256xf32>
    %154 = arith.maximumf %152, %153 : vector<16x256xf32>
    %155 = arith.truncf %154 : vector<16x256xf32> to vector<16x256xbf16>
    %c0_57 = arith.constant 0 : index
    %c128_58 = arith.constant 128 : index
    %156 = vector.load %arg11[%c0_57, %c128_58] : memref<16x512xbf16, #tpu.memory_space<vmem>>, vector<16x256xbf16>
    tpu.vector_store %arg11[%c0_57, %c128_58], %155 {strides = array<i32>} : memref<16x512xbf16, #tpu.memory_space<vmem>>, vector<16x256xbf16>,
    %c0_59 = arith.constant 0 : index
    %c111_60 = arith.constant 111 : index
    %157 = vector.load %arg11[%c0_59, %c111_60] : memref<16x512xbf16, #tpu.memory_space<vmem>>, vector<16x256xbf16>
    %cst_61 = arith.constant 0.000000e+00 : bf16
    %158 = vector.shape_cast %18 : vector<1x256xi1> to vector<1x256xi1>
    %159 = vector.broadcast %158 : vector<1x256xi1> to vector<16x256xi1>
    %160 = vector.broadcast %cst_61 : bf16 to vector<16x256xbf16>
    %161 = arith.select %159, %157, %160 : vector<16x256xi1>, vector<16x256xbf16>
    %c0_62 = arith.constant 0 : index
    %c112_63 = arith.constant 112 : index
    %162 = vector.load %arg11[%c0_62, %c112_63] : memref<16x512xbf16, #tpu.memory_space<vmem>>, vector<16x256xbf16>
    %c0_64 = arith.constant 0 : index
    %c113_65 = arith.constant 113 : index
    %163 = vector.load %arg11[%c0_64, %c113_65] : memref<16x512xbf16, #tpu.memory_space<vmem>>, vector<16x256xbf16>
    %cst_66 = arith.constant 0.000000e+00 : bf16
    %164 = vector.shape_cast %20 : vector<1x256xi1> to vector<1x256xi1>
    %165 = vector.broadcast %164 : vector<1x256xi1> to vector<16x256xi1>
    %166 = vector.broadcast %cst_66 : bf16 to vector<16x256xbf16>
    %167 = arith.select %165, %163, %166 : vector<16x256xi1>, vector<16x256xbf16>
    %c0_67 = arith.constant 0 : index
    %c127_68 = arith.constant 127 : index
    %168 = vector.load %arg11[%c0_67, %c127_68] : memref<16x512xbf16, #tpu.memory_space<vmem>>, vector<16x256xbf16>
    %cst_69 = arith.constant 0.000000e+00 : bf16
    %169 = vector.shape_cast %18 : vector<1x256xi1> to vector<1x256xi1>
    %170 = vector.broadcast %169 : vector<1x256xi1> to vector<16x256xi1>
    %171 = vector.broadcast %cst_69 : bf16 to vector<16x256xbf16>
    %172 = arith.select %170, %168, %171 : vector<16x256xi1>, vector<16x256xbf16>
    %c0_70 = arith.constant 0 : index
    %c128_71 = arith.constant 128 : index
    %173 = vector.load %arg11[%c0_70, %c128_71] : memref<16x512xbf16, #tpu.memory_space<vmem>>, vector<16x256xbf16>
    %c0_72 = arith.constant 0 : index
    %c129_73 = arith.constant 129 : index
    %174 = vector.load %arg11[%c0_72, %c129_73] : memref<16x512xbf16, #tpu.memory_space<vmem>>, vector<16x256xbf16>
    %cst_74 = arith.constant 0.000000e+00 : bf16
    %175 = vector.shape_cast %20 : vector<1x256xi1> to vector<1x256xi1>
    %176 = vector.broadcast %175 : vector<1x256xi1> to vector<16x256xi1>
    %177 = vector.broadcast %cst_74 : bf16 to vector<16x256xbf16>
    %178 = arith.select %176, %174, %177 : vector<16x256xi1>, vector<16x256xbf16>
    %c0_75 = arith.constant 0 : index
    %c143_76 = arith.constant 143 : index
    %179 = vector.load %arg11[%c0_75, %c143_76] : memref<16x512xbf16, #tpu.memory_space<vmem>>, vector<16x256xbf16>
    %cst_77 = arith.constant 0.000000e+00 : bf16
    %180 = vector.shape_cast %18 : vector<1x256xi1> to vector<1x256xi1>
    %181 = vector.broadcast %180 : vector<1x256xi1> to vector<16x256xi1>
    %182 = vector.broadcast %cst_77 : bf16 to vector<16x256xbf16>
    %183 = arith.select %181, %179, %182 : vector<16x256xi1>, vector<16x256xbf16>
    %c0_78 = arith.constant 0 : index
    %c144_79 = arith.constant 144 : index
    %184 = vector.load %arg11[%c0_78, %c144_79] : memref<16x512xbf16, #tpu.memory_space<vmem>>, vector<16x256xbf16>
    %c0_80 = arith.constant 0 : index
    %c145_81 = arith.constant 145 : index
    %185 = vector.load %arg11[%c0_80, %c145_81] : memref<16x512xbf16, #tpu.memory_space<vmem>>, vector<16x256xbf16>
    %cst_82 = arith.constant 0.000000e+00 : bf16
    %186 = vector.shape_cast %20 : vector<1x256xi1> to vector<1x256xi1>
    %187 = vector.broadcast %186 : vector<1x256xi1> to vector<16x256xi1>
    %188 = vector.broadcast %cst_82 : bf16 to vector<16x256xbf16>
    %189 = arith.select %187, %185, %188 : vector<16x256xi1>, vector<16x256xbf16>
    %190 = tpu.concatenate %161, %162, %167, %172, %173, %178, %183, %184, %189 in 0 : vector<16x256xbf16>, vector<16x256xbf16>, vector<16x256xbf16>, vector<16x256xbf16>, vector<16x256xbf16>, vector<16x256xbf16>, vector<16x256xbf16>, vector<16x256xbf16>, vector<16x256xbf16> -> vector<144x256xbf16>
    %c0_83 = arith.constant 0 : index
    %c0_84 = arith.constant 0 : index
    %191 = vector.load %arg6[%c0_83, %c0_84] : memref<16x144xbf16, #tpu.memory_space<vmem>>, vector<16x144xbf16>
    %cst_85 = arith.constant dense<0.000000e+00> : vector<16x256xf32>
    %192 = tpu.matmul %191, %190, %cst_85 {dimension_numbers = #tpu.dot_dimension_numbers<[1], [0], [0], [1], [0, 0, 1, 1], [], []>} : vector<16x144xbf16>, vector<144x256xbf16>, vector<16x256xf32> -> vector<16x256xf32>
    %cst_86 = arith.constant dense<0.000000e+00> : vector<16xf32>
    %193 = vector.multi_reduction <add>, %192, %cst_86 [1] : vector<16x256xf32> to vector<16xf32>
    %194 = vector.shape_cast %193 : vector<16xf32> to vector<16x1xf32>
    %195 = arith.mulf %192, %192 : vector<16x256xf32>
    %cst_87 = arith.constant dense<0.000000e+00> : vector<16xf32>
    %196 = vector.multi_reduction <add>, %195, %cst_87 [1] : vector<16x256xf32> to vector<16xf32>
    %197 = vector.shape_cast %196 : vector<16xf32> to vector<16x1xf32>
    %c0_88 = arith.constant 0 : index
    %c0_89 = arith.constant 0 : index
    %198 = vector.load %arg7[%c0_88, %c0_89] : memref<16x1xf32, #tpu.memory_space<vmem>>, vector<16x1xf32>
    %c0_90 = arith.constant 0 : index
    %c0_91 = arith.constant 0 : index
    %199 = vector.load %arg8[%c0_90, %c0_91] : memref<16x1xf32, #tpu.memory_space<vmem>>, vector<16x1xf32>
    %c0_92 = arith.constant 0 : index
    %c0_93 = arith.constant 0 : index
    %200 = vector.load %arg9[%c0_92, %c0_93] : memref<16x1xf32, #tpu.memory_space<vmem>>, vector<16x1xf32>
    %201 = vector.extract_strided_slice %198 {offsets = [0, 0], sizes = [8, 1], strides = [1, 1]} : vector<16x1xf32> to vector<8x1xf32>
    %202 = vector.extract_strided_slice %194 {offsets = [0, 0], sizes = [8, 1], strides = [1, 1]} : vector<16x1xf32> to vector<8x1xf32>
    %203 = vector.extract_strided_slice %197 {offsets = [0, 0], sizes = [8, 1], strides = [1, 1]} : vector<16x1xf32> to vector<8x1xf32>
    %cst_94 = arith.constant 2.560000e+02 : f32
    %204 = vector.broadcast %cst_94 : f32 to vector<8x1xf32>
    %205 = arith.mulf %204, %201 : vector<8x1xf32>
    %206 = arith.addf %202, %205 : vector<8x1xf32>
    %cst_95 = arith.constant dense<0.000000e+00> : vector<1xf32>
    %207 = vector.multi_reduction <add>, %206, %cst_95 [0] : vector<8x1xf32> to vector<1xf32>
    %208 = vector.shape_cast %207 : vector<1xf32> to vector<1x1xf32>
    %cst_96 = arith.constant 2.000000e+00 : f32
    %209 = vector.broadcast %cst_96 : f32 to vector<8x1xf32>
    %210 = arith.mulf %209, %201 : vector<8x1xf32>
    %211 = arith.mulf %210, %202 : vector<8x1xf32>
    %212 = arith.addf %203, %211 : vector<8x1xf32>
    %cst_97 = arith.constant 2.560000e+02 : f32
    %213 = vector.broadcast %cst_97 : f32 to vector<8x1xf32>
    %214 = arith.mulf %213, %201 : vector<8x1xf32>
    %215 = arith.mulf %214, %201 : vector<8x1xf32>
    %216 = arith.addf %212, %215 : vector<8x1xf32>
    %cst_98 = arith.constant dense<0.000000e+00> : vector<1xf32>
    %217 = vector.multi_reduction <add>, %216, %cst_98 [0] : vector<8x1xf32> to vector<1xf32>
    %218 = vector.shape_cast %217 : vector<1xf32> to vector<1x1xf32>
    %cst_99 = arith.constant 4.8828125E-4 : f32
    %219 = vector.broadcast %cst_99 : f32 to vector<1x1xf32>
    %220 = arith.mulf %208, %219 : vector<1x1xf32>
    %cst_100 = arith.constant 4.8828125E-4 : f32
    %221 = vector.broadcast %cst_100 : f32 to vector<1x1xf32>
    %222 = arith.mulf %218, %221 : vector<1x1xf32>
    %223 = arith.mulf %220, %220 : vector<1x1xf32>
    %224 = arith.subf %222, %223 : vector<1x1xf32>
    %cst_101 = arith.constant 0.000000e+00 : f32
    %225 = vector.broadcast %cst_101 : f32 to vector<1x1xf32>
    %226 = arith.maximumf %224, %225 : vector<1x1xf32>
    %cst_102 = arith.constant 9.99999974E-6 : f32
    %227 = vector.broadcast %cst_102 : f32 to vector<1x1xf32>
    %228 = arith.addf %226, %227 : vector<1x1xf32>
    %229 = math.rsqrt %228 : vector<1x1xf32>
    %230 = vector.extract_strided_slice %199 {offsets = [0, 0], sizes = [8, 1], strides = [1, 1]} : vector<16x1xf32> to vector<8x1xf32>
    %231 = vector.broadcast %229 : vector<1x1xf32> to vector<8x1xf32>
    %232 = arith.mulf %230, %231 : vector<8x1xf32>
    %233 = vector.broadcast %220 : vector<1x1xf32> to vector<8x1xf32>
    %234 = arith.subf %201, %233 : vector<8x1xf32>
    %235 = arith.mulf %234, %232 : vector<8x1xf32>
    %236 = vector.extract_strided_slice %200 {offsets = [0, 0], sizes = [8, 1], strides = [1, 1]} : vector<16x1xf32> to vector<8x1xf32>
    %237 = arith.addf %235, %236 : vector<8x1xf32>
    %238 = vector.extract_strided_slice %198 {offsets = [8, 0], sizes = [8, 1], strides = [1, 1]} : vector<16x1xf32> to vector<8x1xf32>
    %239 = vector.extract_strided_slice %194 {offsets = [8, 0], sizes = [8, 1], strides = [1, 1]} : vector<16x1xf32> to vector<8x1xf32>
    %240 = vector.extract_strided_slice %197 {offsets = [8, 0], sizes = [8, 1], strides = [1, 1]} : vector<16x1xf32> to vector<8x1xf32>
    %cst_103 = arith.constant 2.560000e+02 : f32
    %241 = vector.broadcast %cst_103 : f32 to vector<8x1xf32>
    %242 = arith.mulf %241, %238 : vector<8x1xf32>
    %243 = arith.addf %239, %242 : vector<8x1xf32>
    %cst_104 = arith.constant dense<0.000000e+00> : vector<1xf32>
    %244 = vector.multi_reduction <add>, %243, %cst_104 [0] : vector<8x1xf32> to vector<1xf32>
    %245 = vector.shape_cast %244 : vector<1xf32> to vector<1x1xf32>
    %cst_105 = arith.constant 2.000000e+00 : f32
    %246 = vector.broadcast %cst_105 : f32 to vector<8x1xf32>
    %247 = arith.mulf %246, %238 : vector<8x1xf32>
    %248 = arith.mulf %247, %239 : vector<8x1xf32>
    %249 = arith.addf %240, %248 : vector<8x1xf32>
    %cst_106 = arith.constant 2.560000e+02 : f32
    %250 = vector.broadcast %cst_106 : f32 to vector<8x1xf32>
    %251 = arith.mulf %250, %238 : vector<8x1xf32>
    %252 = arith.mulf %251, %238 : vector<8x1xf32>
    %253 = arith.addf %249, %252 : vector<8x1xf32>
    %cst_107 = arith.constant dense<0.000000e+00> : vector<1xf32>
    %254 = vector.multi_reduction <add>, %253, %cst_107 [0] : vector<8x1xf32> to vector<1xf32>
    %255 = vector.shape_cast %254 : vector<1xf32> to vector<1x1xf32>
    %cst_108 = arith.constant 4.8828125E-4 : f32
    %256 = vector.broadcast %cst_108 : f32 to vector<1x1xf32>
    %257 = arith.mulf %245, %256 : vector<1x1xf32>
    %cst_109 = arith.constant 4.8828125E-4 : f32
    %258 = vector.broadcast %cst_109 : f32 to vector<1x1xf32>
    %259 = arith.mulf %255, %258 : vector<1x1xf32>
    %260 = arith.mulf %257, %257 : vector<1x1xf32>
    %261 = arith.subf %259, %260 : vector<1x1xf32>
    %cst_110 = arith.constant 0.000000e+00 : f32
    %262 = vector.broadcast %cst_110 : f32 to vector<1x1xf32>
    %263 = arith.maximumf %261, %262 : vector<1x1xf32>
    %cst_111 = arith.constant 9.99999974E-6 : f32
    %264 = vector.broadcast %cst_111 : f32 to vector<1x1xf32>
    %265 = arith.addf %263, %264 : vector<1x1xf32>
    %266 = math.rsqrt %265 : vector<1x1xf32>
    %267 = vector.extract_strided_slice %199 {offsets = [8, 0], sizes = [8, 1], strides = [1, 1]} : vector<16x1xf32> to vector<8x1xf32>
    %268 = vector.broadcast %266 : vector<1x1xf32> to vector<8x1xf32>
    %269 = arith.mulf %267, %268 : vector<8x1xf32>
    %270 = vector.broadcast %257 : vector<1x1xf32> to vector<8x1xf32>
    %271 = arith.subf %238, %270 : vector<8x1xf32>
    %272 = arith.mulf %271, %269 : vector<8x1xf32>
    %273 = vector.extract_strided_slice %200 {offsets = [8, 0], sizes = [8, 1], strides = [1, 1]} : vector<16x1xf32> to vector<8x1xf32>
    %274 = arith.addf %272, %273 : vector<8x1xf32>
    %275 = tpu.concatenate %232, %269 in 0 : vector<8x1xf32>, vector<8x1xf32> -> vector<16x1xf32>
    %276 = tpu.concatenate %237, %274 in 0 : vector<8x1xf32>, vector<8x1xf32> -> vector<16x1xf32>
    %277 = vector.broadcast %275 : vector<16x1xf32> to vector<16x256xf32>
    %278 = arith.mulf %192, %277 : vector<16x256xf32>
    %279 = vector.broadcast %276 : vector<16x1xf32> to vector<16x256xf32>
    %280 = arith.addf %278, %279 : vector<16x256xf32>
    %cst_112 = arith.constant 0.000000e+00 : f32
    %281 = vector.broadcast %cst_112 : f32 to vector<16x256xf32>
    %282 = arith.maximumf %280, %281 : vector<16x256xf32>
    %c0_113 = arith.constant 0 : index
    %c0_114 = arith.constant 0 : index
    %c0_115 = arith.constant 0 : index
    %283 = vector.load %arg1[%c0_113, %c0_114, %c0_115] : memref<1x16x256xf32, #tpu.memory_space<vmem>>, vector<1x16x256xf32>
    %284 = vector.shape_cast %283 : vector<1x16x256xf32> to vector<16x256xf32>
    %285 = arith.addf %284, %282 : vector<16x256xf32>
    %cst_116 = arith.constant 0.000000e+00 : f32
    %286 = vector.broadcast %cst_116 : f32 to vector<16x256xf32>
    %287 = arith.maximumf %285, %286 : vector<16x256xf32>
    %c0_117 = arith.constant 0 : index
    %c0_118 = arith.constant 0 : index
    %c0_119 = arith.constant 0 : index
    %288 = vector.load %arg10[%c0_117, %c0_118, %c0_119] : memref<1x16x256xf32, #tpu.memory_space<vmem>>, vector<1x16x256xf32>
    %289 = vector.shape_cast %288 : vector<1x16x256xf32> to vector<16x256xf32>
    %290 = vector.shape_cast %287 : vector<16x256xf32> to vector<1x16x256xf32>
    tpu.vector_store %arg10[%c0_117, %c0_118, %c0_119], %290 {strides = array<i32>} : memref<1x16x256xf32, #tpu.memory_space<vmem>>, vector<1x16x256xf32>,
    return
  }
  func.func @transform_0(%arg0: i32) -> (i32, i32, i32) {
    %c0_i32 = arith.constant 0 : i32
    %c0_i32_0 = arith.constant 0 : i32
    %c0_i32_1 = arith.constant 0 : i32
    return %arg0, %c0_i32, %c0_i32_0 : i32, i32, i32
  }
  func.func @transform_1(%arg0: i32) -> (i32, i32) {
    %c0_i32 = arith.constant 0 : i32
    %c0_i32_0 = arith.constant 0 : i32
    %c0_i32_1 = arith.constant 0 : i32
    return %c0_i32, %c0_i32_0 : i32, i32
  }
  func.func @transform_2(%arg0: i32) -> (i32, i32) {
    %c0_i32 = arith.constant 0 : i32
    %c0_i32_0 = arith.constant 0 : i32
    %c0_i32_1 = arith.constant 0 : i32
    return %c0_i32, %c0_i32_0 : i32, i32
  }
  func.func @transform_3(%arg0: i32) -> (i32, i32) {
    %c0_i32 = arith.constant 0 : i32
    %c0_i32_0 = arith.constant 0 : i32
    %c0_i32_1 = arith.constant 0 : i32
    return %c0_i32, %c0_i32_0 : i32, i32
  }
  func.func @transform_4(%arg0: i32) -> (i32, i32) {
    %c0_i32 = arith.constant 0 : i32
    %c0_i32_0 = arith.constant 0 : i32
    %c0_i32_1 = arith.constant 0 : i32
    return %c0_i32, %c0_i32_0 : i32, i32
  }
  func.func @transform_5(%arg0: i32) -> (i32, i32) {
    %c0_i32 = arith.constant 0 : i32
    %c0_i32_0 = arith.constant 0 : i32
    %c0_i32_1 = arith.constant 0 : i32
    return %c0_i32, %c0_i32_0 : i32, i32
  }
  func.func @transform_6(%arg0: i32) -> (i32, i32) {
    %c0_i32 = arith.constant 0 : i32
    %c0_i32_0 = arith.constant 0 : i32
    %c0_i32_1 = arith.constant 0 : i32
    return %c0_i32, %c0_i32_0 : i32, i32
  }
  func.func @transform_7(%arg0: i32) -> (i32, i32) {
    %c0_i32 = arith.constant 0 : i32
    %c0_i32_0 = arith.constant 0 : i32
    %c0_i32_1 = arith.constant 0 : i32
    return %c0_i32, %c0_i32_0 : i32, i32
  }
  func.func @transform_8(%arg0: i32) -> (i32, i32) {
    %c0_i32 = arith.constant 0 : i32
    %c0_i32_0 = arith.constant 0 : i32
    %c0_i32_1 = arith.constant 0 : i32
    return %c0_i32, %c0_i32_0 : i32, i32
  }
  func.func @transform_9(%arg0: i32) -> (i32, i32, i32) {
    %c0_i32 = arith.constant 0 : i32
    %c0_i32_0 = arith.constant 0 : i32
    %c0_i32_1 = arith.constant 0 : i32
    return %arg0, %c0_i32, %c0_i32_0 : i32, i32, i32
  }
}

</mosaic_0001>

<bundles_post_ra>
// kernel: tpu_custom_call.1
= control target key start
LH: loop header
LB: loop body
LE: loop exit
PB: predicated region body
PF: predicated region fallthrough
CT: control target
= control target key end

     0   :  { %14 = vsyncpa [#allocation4], 0  ;;  %s2442_s0 = inlined_call_operand.vmem [shape: f32[2,16,256], index: 0, kind: input, shape index: {}]   ;;  %s2443_s1 = inlined_call_operand.vmem [shape: bf16[16,144], index: 1, kind: input, shape index: {}]   ;;  %s2444_s2 = inlined_call_operand.vmem [shape: f32[16,1], index: 2, kind: input, shape index: {}]   ;;  %s2445_s3 = inlined_call_operand.vmem [shape: f32[16,1], index: 3, kind: input, shape index: {}]   ;;  %s2446_s4 = inlined_call_operand.vmem [shape: f32[16,1], index: 4, kind: input, shape index: {}]   ;;  %s2447_s5 = inlined_call_operand.vmem [shape: bf16[16,144], index: 5, kind: input, shape index: {}]   ;;  %s2448_s6 = inlined_call_operand.vmem [shape: f32[16,1], index: 6, kind: input, shape index: {}]   ;;  %s2449_s7 = inlined_call_operand.vmem [shape: f32[16,1], index: 7, kind: input, shape index: {}]   ;;  %s2450_s8 = inlined_call_operand.vmem [shape: f32[16,1], index: 8, kind: input, shape index: {}]   ;;  %s2451_s9 = inlined_call_operand.hbm [shape: f32[2,16,256], index: 9, kind: output, shape index: {}]  }
   0x1   :  { %16 = vsyncpa [#allocation4 + $0x1], 0  ;;  %s1789_s30 = smov 0   ;;  %s1791_s10 = smov 0  }
   0x2   :  { %s1793_s11 = smov 0   ;;  %s1795_s12 = smov 0  }
   0x3 LB: > { %s1810_s13 = sadd.s32 4294967295, %s1721_s12   ;;  %s1499_s14 = sadd.s32 4294967294, %s1721_s12   ;;  %s1721_s12 = sphi %s1795_s12, %s2506_s12   ;;  %s1717_s11 = sphi %s1793_s11, %s2505_s11   ;;  %s1713_s10 = sphi %s1791_s10, %s2504_s10   ;;  %s1709_s30 = sphi %s1789_s30, %s2503_s30  }
   0x4   : > { %s1814_s15 = sadd.s32 1, %s1721_s12   ;;  %s223_s16 = sadd.s32 1, %s1717_s11 }
   0x5   : > { %s220_s17 = ssub.s32 %s1721_s12, %s1814_s15  ;;  %p233_p0 = scmp.ne.s32.totalorder %s1717_s11, %s1713_s10 }
   0x6   : > { %p221_p1 = scmp.eq.s32.totalorder %s220_s17, 0  ;;  %p234_p2 = scmp.eq.s32.totalorder %s1810_s13, 1 }
   0x7   : > { %p239_p3 = scmp.ne.s32.totalorder %s1713_s10, %s1709_s30  ;;  %p240_p4 = scmp.eq.s32.totalorder %s1499_s14, 1 }
   0x8   : > { %s1825_s18 = scalar_select %p221_p1, %s1717_s11, %s223_s16  }
   0x9   : > { %p1827_p5 = por %p234_p2, %p233_p0  ;;  %p1831_p6 = por %p240_p4, %p239_p3 }
   0xa   : > { %p1502_p7 = scmp.ge.s32.totalorder %s1721_s12, 1  ;;  %p290_p8 = scmp.lt.s32.totalorder %s1721_s12, 3 }
   0xc   : > { %p291_p9 = pnand %p1502_p7, %p290_p8 }
   0xd   : > { %p326_p10 = scmp.lt.s32.totalorder (!%p291_p9), %s1810_s13, 1  ;;  %s1724_s26 = smov (!%p291_p9), 15  }
   0xe   : > { %294 = sbr.rel (%p291_p9) target bundleno = 1792 (0x700), region = 56  ;;  %s2463_s27 = smov (!%p291_p9), 127  }
   0xf   : > { %s1726_s28 = smov (!%p291_p9), 1   ;;  %s1727_s29 = smov (!%p291_p9), 113  }
  0x10   : > { %s2459_s14 = smov (!%p291_p9), 17   ;;  %s1729_s16 = smov (!%p291_p9), 95  }
  0x11   : > { %s1730_s17 = smov (!%p291_p9), 111   ;;  %s2465_s23 = smov (!%p291_p9), 126  }
  0x12   : > { %s1734_s24 = smov (!%p291_p9), 112  }
  0x13   : > { %v334_v0 = vlaneseq  ;;  %v1723_v1 = vmov 0   ;;  %s327_s21 = scalar_select %p326_p10, %s1810_s13, 1  ;;  %vm456_vm6 = vcmask 121856   ;;  %vm445_vm9 = vcmask 7168  }
  0x14   : > { %365 = vst [vmem:[#allocation2] sm:$0xf] %v1723_v1  ;;  %366 = vst [vmem:[#allocation2 + $0x10] sm:$0xf] %v1723_v1  ;;  %1633 = vset.pattern.permute.xlu1 %v1723_v1  ;;  %1634 = vset.pattern.permute.xlu0 %v1723_v1  ;;  %vm2458_vm12 = vcmask 1039360  }
  0x15   : > { %367 = vst [vmem:[#allocation2 + $0xc] sm:$0xf] %v1723_v1  ;;  %368 = vst [vmem:[#allocation2 + $0x1c] sm:$0xf] %v1723_v1  ;;  %v335_v2 = vand.u32 127, %v334_v0  ;;  %s1573_s22 = sshll.u32 %s327_s21, 5 }
  0x16   : > { %s1850_s25 = scalar_lea.vmem %s2442_s0, %s1573_s22  ;;  %s1731_s21 = smov 96  }
  0x17   : > { %v336_v3 = vadd.s32 128, %v335_v2  ;;  %v341_v4 = vand.u32 15, %v335_v2  ;;  %v369_v8 = vld [vmem:[%s1850_s25] sm:$0xff]  ;;  %v370_v9 = vld [vmem:[%s1850_s25 + $0x8] sm:$0xff]  ;;  %v371_v11 = vld [vmem:[%s1850_s25 + $0x10] sm:$0xff]  ;;  %s1732_s22 = smov 110  }
  0x18   : > { %v372_v12 = vld [vmem:[%s1850_s25 + $0x18] sm:$0xff]  ;;  %v1862_v13 = vpack.c.bf16 %v370_v9, %v369_v8  ;;  %v1658_v20 = vpack.c.bf16 %v371_v11, %v369_v8 }
  0x19   : > { %v348_v5 = vand.u32 15, %v336_v3  ;;  %vm361_vm0 = vcmp.ge.s32.totalorder %v341_v4, 1  ;;  %vm1839_vm1 = vcmp.lt.s32.totalorder %v341_v4, 15  ;;  %v1867_v14 = vpack.c.bf16 %v372_v12, %v371_v11 }
  0x1a   : > { %385 = vst [vmem:[#allocation2 + $0x4] sm:$0xff] %v1862_v13  ;;  %v1657_v19 = vpack.c.bf16 %v372_v12, %v370_v9 }
  0x1b   : > { %vm362_vm2 = vcmp.ge.s32.totalorder %v348_v5, 1  ;;  %vm1843_vm3 = vcmp.lt.s32.totalorder %v348_v5, 15  ;;  %386 = vst [vmem:[#allocation2 + $0x14] sm:$0xff] %v1867_v14 }
  0x1c   : > { %vm395_vm4 = vmpackc.low %vm362_vm2, %vm361_vm0  ;;  %v1869_v16 = vld [vmem:[#allocation2 + $0xc] sm:$0xf]  ;;  %v1871_v17 = vld [vmem:[#allocation2 + $0x1c] sm:$0xf]  ;;  %vm417_vm0 = vcmask 924672   ;;  %vm467_vm2 = vcmask 138240  }
  0x1d   : > { %v1854_v10 = vsel %vm395_vm4, 65537, %v1723_v1  ;;  %vm412_vm5 = vmpackc.low %vm1843_vm3, %vm1839_vm1  ;;  %v1530_v18 = vcombine.low %v1869_v16, %v1871_v17 }
  0x1e   : > { %453 = vrot.lane.b32.xlu0 %v1854_v10, %s1724_s26  ;;  %425 = vrot.lane.b32.xlu1 %v1854_v10, %s2463_s27  ;;  %v413_v15 = vsel %vm412_vm5, 65537, %v1723_v1  ;;  %s2461_s26 = smov 94   ;;  %vm2452_vm5 = vcmask 777216  }
  0x21   : > { %v1920_v41 = vld [vmem:[#allocation2 + $0x8] sm:$0xf]  ;;  %v1949_v53 = vld [vmem:[#allocation2] sm:$0xff] }
  0x22   : > { %442 = vrot.lane.b32.xlu0 %v413_v15, %s1726_s28  ;;  %414 = vrot.lane.b32.xlu1 %v413_v15, %s1727_s29  ;;  %v1922_v44 = vld [vmem:[#allocation2 + $0x18] sm:$0xf]  ;;  %v1951_v54 = vld [vmem:[#allocation2 + $0x10] sm:$0xff] }
  0x23   : > { %v1512_v2 = vcombine.high %v1949_v53, %v1951_v54  ;;  %v1513_v8 = vcombine.low %v1920_v41, %v1922_v44 }
  0x26   : > { %464 = vrot.lane.b32.xlu0 %v413_v15, %s2459_s14  ;;  %627 = vrot.lane.b32.xlu1 %v1530_v18, %s1729_s16 }
  0x2a   : > { %625 = vrot.lane.b32.xlu0 %v1657_v19, %s1729_s16  ;;  %623 = vrot.lane.b32.xlu1 %v1658_v20, %s1729_s16 }
  0x2e   : > { %563 = vrot.lane.b32.xlu1 %v1657_v19, %s1730_s17  ;;  %561 = vrot.lane.b32.xlu0 %v1658_v20, %s1730_s17 }
  0x90   : > { %v454_v21 = vpop.permute.xlu0 %453  ;;  %v426_v22 = vpop.permute.xlu1 %425 }
  0x91   : > { %v455_v23 = vrot.slane %v454_v21, 4  ;;  %v427_v37 = vrot.slane %v426_v22, 4 }
  0x93   : > { %v1883_v24 = vsel %vm456_vm6, %v455_v23, %v454_v21  ;;  %vm1885_vm7 = vcmp.ne.s16.totalorder %v455_v23, 0  ;;  %v1934_v48 = vsel %vm2458_vm12, %v427_v37, %v426_v22  ;;  %vm1943_vm15 = vcmp.ne.s16.totalorder %v427_v37, 0 }
  0x94   : > { %vm458_vm8 = vcmp.ne.s16.totalorder %v1883_v24, 0  ;;  %v443_v26 = vpop.permute.xlu0 %442  ;;  %v415_v27 = vpop.permute.xlu1 %414  ;;  %v461_v28 = vsel %vm1885_vm7, %v1869_v16, 0  ;;  %v463_v29 = vsel %vm1885_vm7, %v1871_v17, 0  ;;  %vm2456_vm14 = vcmp.ne.s16.totalorder %v1934_v48, 0 }
  0x95   : > { %v444_v30 = vrot.slane %v443_v26, 4  ;;  %v416_v31 = vrot.slane %v415_v27, 4  ;;  %v1527_v32 = vcombine.low %v461_v28, %v463_v29  ;;  %v460_v33 = vsel %vm458_vm8, %v1862_v13, 0 }
  0x96   : > { %v462_v34 = vsel %vm458_vm8, %v1867_v14, 0  ;;  %v433_v57 = vsel %vm1943_vm15, %v1920_v41, 0  ;;  %v435_v58 = vsel %vm1943_vm15, %v1922_v44, 0  ;;  %v432_v59 = vsel %vm2456_vm14, %v1949_v53, 0 }
  0x97   : > { %vm1902_vm10 = vcmp.ne.s16.totalorder %v444_v30, 0  ;;  %vm1906_vm11 = vcmp.ne.s16.totalorder %v416_v31, 0  ;;  %605 = vrot.lane.b32.xlu0 %v1527_v32, %s1731_s21  ;;  %v1912_v38 = vsel %vm445_vm9, %v444_v30, %v443_v26  ;;  %v1525_v43 = vcombine.low %v460_v33, %v462_v34 }
  0x98   : > { %v450_v39 = vsel %vm1902_vm10, %v1869_v16, 0  ;;  %v452_v40 = vsel %vm1902_vm10, %v1871_v17, 0  ;;  %v422_v45 = vsel %vm1906_vm11, %v1920_v41, 0  ;;  %v424_v46 = vsel %vm1906_vm11, %v1922_v44, 0  ;;  %v465_v61 = vpop.permute.xlu0 %464  ;;  %v628_v19 = vpop.permute.xlu1 %627 }
  0x99   : > { %v1524_v42 = vcombine.low %v450_v39, %v452_v40  ;;  %vm447_vm13 = vcmp.ne.s16.totalorder %v1912_v38, 0  ;;  %v1516_v47 = vcombine.low %v422_v45, %v424_v46  ;;  %v1526_v49 = vcombine.high %v460_v33, %v462_v34 }
  0x9a   : > { %v449_v50 = vsel %vm447_vm13, %v1862_v13, 0  ;;  %v451_v51 = vsel %vm447_vm13, %v1867_v14, 0  ;;  %v434_v60 = vsel %vm2456_vm14, %v1951_v54, 0  ;;  %v1967_v62 = vsel %vm417_vm0, %v416_v31, %v415_v27 }
  0x9b   : > { %583 = vrot.lane.b32.xlu1 %v1524_v42, %s1732_s22  ;;  %601 = vrot.lane.b32.xlu0 %v1525_v43, %s1731_s21  ;;  %v1522_v55 = vcombine.low %v449_v50, %v451_v51  ;;  %v1523_v56 = vcombine.high %v449_v50, %v451_v51  ;;  %v1519_v63 = vcombine.low %v433_v57, %v435_v58  ;;  %v466_v1 = vrot.slane %v465_v61, 4 }
  0x9c   : > { %v1518_v0 = vcombine.high %v432_v59, %v434_v60  ;;  %vm419_vm1 = vcmp.ne.s16.totalorder %v1967_v62, 0  ;;  %v1517_v3 = vcombine.low %v432_v59, %v434_v60  ;;  %v626_v20 = vpop.permute.xlu0 %625  ;;  %v624_v23 = vpop.permute.xlu1 %623  ;;  %vm400_vm6 = vcmask 908288  }
  0x9d   : > { %v421_v4 = vsel %vm419_vm1, %v1949_v53, 0  ;;  %v423_v5 = vsel %vm419_vm1, %v1951_v54, 0  ;;  %v1981_v6 = vsel %vm467_vm2, %v466_v1, %v465_v61  ;;  %vm1997_vm4 = vcmp.ne.s16.totalorder %v466_v1, 0 }
  0x9e   : > { %v1515_v7 = vcombine.high %v421_v4, %v423_v5  ;;  %vm2453_vm3 = vcmp.ne.s16.totalorder %v1981_v6, 0  ;;  %v1514_v12 = vcombine.low %v421_v4, %v423_v5  ;;  %v630_v27 = vsel %vm2452_vm5, %v624_v23, %v626_v20 }
  0x9f   : > { %603 = vrot.lane.b32.xlu1 %v1526_v49, %s1731_s21  ;;  %526 = vrot.lane.b32.xlu0 %v1516_v47, %s2465_s23  ;;  %v471_v9 = vsel %vm2453_vm3, %v1862_v13, 0  ;;  %v473_v11 = vsel %vm2453_vm3, %v1867_v14, 0  ;;  %v472_v13 = vsel %vm1997_vm4, %v1869_v16, 0  ;;  %v474_v14 = vsel %vm1997_vm4, %v1871_v17, 0 }
  0xa0   : > { %v1531_v18 = vcombine.low %v471_v9, %v473_v11  ;;  %v1533_v21 = vcombine.low %v472_v13, %v474_v14  ;;  %v1532_v22 = vcombine.high %v471_v9, %v473_v11  ;;  %v562_v26 = vpop.permute.xlu0 %561  ;;  %v564_v16 = vpop.permute.xlu1 %563  ;;  %v631_v17 = vsel %vm2452_vm5, %v626_v20, %v628_v19 }
  0xa1   : > { %v565_v28 = vsel %vm400_vm6, %v562_v26, %v564_v16  ;;  %vm2454_vm0 = vcmask 785408   ;;  %vm2455_vm5 = vcmask 900096   ;;  %vm2457_vm3 = vcmask 916480  }
  0xa3   : > { %579 = vrot.lane.b32.xlu1 %v1522_v55, %s1732_s22  ;;  %581 = vrot.lane.b32.xlu0 %v1523_v56, %s1732_s22 }
  0xa7   : > { %548 = vrot.lane.b32.xlu1 %v1519_v63, %s1734_s24  ;;  %546 = vrot.lane.b32.xlu0 %v1518_v0, %s1734_s24 }
  0xab   : > { %503 = vrot.lane.b32.xlu1 %v1512_v2, %s2463_s27  ;;  %544 = vrot.lane.b32.xlu0 %v1517_v3, %s1734_s24 }
  0xaf   : > { %397 = vrot.lane.b32.xlu0 %v1854_v10, %s1730_s17  ;;  %524 = vrot.lane.b32.xlu1 %v1515_v7, %s2465_s23  ;;  %v1511_v10 = vcombine.low %v1949_v53, %v1951_v54 }
  0xb3   : > { %505 = vrot.lane.b32.xlu0 %v1513_v8, %s2463_s27  ;;  %522 = vrot.lane.b32.xlu1 %v1514_v12, %s2465_s23 }
  0xb7   : > { %501 = vrot.lane.b32.xlu1 %v1511_v10, %s2463_s27  ;;  %645 = vrot.lane.b32.xlu0 %v1531_v18, %s2461_s26  ;;  %s323_s27 = sand.u32 1, %s1713_s10  }
  0xb8   : > { %s1503_s23 = sshll.u32 %s323_s27, 5 }
  0xbb   : > { %649 = vrot.lane.b32.xlu0 %v1533_v21, %s2461_s26  ;;  %647 = vrot.lane.b32.xlu1 %v1532_v22, %s2461_s26  ;;  %s1736_s26 = smov [#allocation3]  }
  0xbc   : > { %s1665_s28 = sshll.u32 %s1736_s26, 4  ;;  %s1666_s28 = int_to_ptr.vmem [resolvable:$false] %s1665_s28 }
  0xbd   : > { %s1667_s29 = scalar_lea.vmem %s1666_s28, 1024 }
  0xbf   : > { %707 = vrot.lane.b32.xlu1 %v624_v23, %s2459_s14  ;;  %689 = vrot.lane.b32.xlu0 %v562_v26, %s2459_s14 }
  0xc3   : > { %693 = vrot.lane.b32.xlu1 %v564_v16, %s2459_s14  ;;  %711 = vrot.lane.b32.xlu0 %v631_v17, %s2459_s14 }
  0xc7   : > { %709 = vrot.lane.b32.xlu1 %v630_v27, %s2459_s14  ;;  %691 = vrot.lane.b32.xlu0 %v565_v28, %s2459_s14 }
 0x109   : > { %v606_v29 = vpop.permute.xlu0 %605 }
 0x10d   : > { %v584_v30 = vpop.permute.xlu1 %583  ;;  %v602_v31 = vpop.permute.xlu0 %601 }
 0x111   : > { %v604_v32 = vpop.permute.xlu1 %603  ;;  %v527_v33 = vpop.permute.xlu0 %526 }
 0x112   : > { %681 = vrot.lane.b32.xlu1 %v527_v33, %s2459_s14  ;;  %v609_v42 = vsel %vm2454_vm0, %v604_v32, %v606_v29  ;;  %v608_v50 = vsel %vm2454_vm0, %v602_v31, %v604_v32  ;;  %vm528_vm0 = vcmask 1031168  }
 0x115   : > { %v580_v34 = vpop.permute.xlu1 %579  ;;  %v582_v37 = vpop.permute.xlu0 %581 }
 0x116   : > { %695 = vrot.lane.b32.xlu1 %v580_v34, %s2459_s14  ;;  %v586_v46 = vsel %vm2455_vm5, %v580_v34, %v582_v37  ;;  %v587_v56 = vsel %vm2455_vm5, %v582_v37, %v584_v30 }
 0x119   : > { %v549_v39 = vpop.permute.xlu1 %548  ;;  %v547_v40 = vpop.permute.xlu0 %546 }
 0x11a   : > { %687 = vrot.lane.b32.xlu0 %v549_v39, %s2459_s14  ;;  %705 = vrot.lane.b32.xlu1 %v609_v42, %s2459_s14  ;;  %v552_v61 = vsel %vm2457_vm3, %v547_v40, %v549_v39 }
 0x11d   : > { %v504_v43 = vpop.permute.xlu1 %503  ;;  %v545_v45 = vpop.permute.xlu0 %544 }
 0x11e   : > { %701 = vrot.lane.b32.xlu0 %v602_v31, %s2459_s14  ;;  %697 = vrot.lane.b32.xlu1 %v586_v46, %s2459_s14  ;;  %v551_v3 = vsel %vm2457_vm3, %v545_v45, %v547_v40  ;;  %vm755_vm3 = vcmask 130048  }
 0x121   : > { %v398_v47 = vpop.permute.xlu0 %397  ;;  %v525_v49 = vpop.permute.xlu1 %524 }
 0x122   : > { %703 = vrot.lane.b32.xlu0 %v608_v50, %s2459_s14  ;;  %v399_v58 = vrot.slane %v398_v47, 4  ;;  %v530_v0 = vsel %vm528_vm0, %v525_v49, %v527_v33 }
 0x124   : > { %v2041_v63 = vsel %vm400_vm6, %v399_v58, %v398_v47  ;;  %vm2048_vm14 = vcmp.ne.s16.totalorder %v399_v58, 0 }
 0x125   : > { %v506_v51 = vpop.permute.xlu0 %505  ;;  %v523_v55 = vpop.permute.xlu1 %522  ;;  %vm402_vm5 = vcmp.ne.s16.totalorder %v2041_v63, 0  ;;  %v405_v10 = vsel %vm2048_vm14, %v1920_v41, 0  ;;  %v407_v18 = vsel %vm2048_vm14, %v1922_v44, 0 }
 0x126   : > { %699 = vrot.lane.b32.xlu0 %v587_v56, %s2459_s14  ;;  %v508_v57 = vsel %vm2458_vm12, %v504_v43, %v506_v51  ;;  %v529_v5 = vsel %vm528_vm0, %v523_v55, %v525_v49  ;;  %v404_v7 = vsel %vm402_vm5, %v1949_v53, 0  ;;  %v406_v8 = vsel %vm402_vm5, %v1951_v54, 0  ;;  %v1641_v53 = vld [vmem:[%s2443_s1 + $0x4] ss:$8 sps:$4 sm:$0xff]  }
 0x127   : > { %673 = vrot.lane.b32.xlu1 %v508_v57, %s2459_s14  ;;  %v1509_v54 = vcombine.high %v404_v7, %v406_v8  ;;  %v1510_v13 = vcombine.low %v405_v10, %v407_v18  ;;  %1536 = vmatprep.mubr.msk.bf16.mxu0 %vm755_vm3, %v1641_v53  ;;  %v1508_v19 = vcombine.low %v404_v7, %v406_v8 }
 0x129   : > { %v502_v59 = vpop.permute.xlu1 %501  ;;  %v646_v60 = vpop.permute.xlu0 %645 }
 0x12a   : > { %675 = vrot.lane.b32.xlu0 %v506_v51, %s2459_s14  ;;  %v507_v12 = vsel %vm2458_vm12, %v502_v59, %v504_v43  ;;  %vm651_vm12 = vcmask 769024  }
 0x12b   : > { %685 = vrot.lane.b32.xlu1 %v552_v61, %s2459_s14 }
 0x12d   : > { %v650_v1 = vpop.permute.xlu0 %649  ;;  %v648_v2 = vpop.permute.xlu1 %647 }
 0x12e   : > { %679 = vrot.lane.b32.xlu0 %v530_v0, %s2459_s14  ;;  %v652_v20 = vsel %vm651_vm12, %v646_v60, %v648_v2  ;;  %v653_v23 = vsel %vm651_vm12, %v648_v2, %v650_v1 }
 0x12f   : > { %683 = vrot.lane.b32.xlu1 %v551_v3, %s2459_s14 }
 0x131   : > { %v708_v9 = vpop.permute.xlu1 %707  ;;  %v690_v11 = vpop.permute.xlu0 %689 }
 0x132   : > { %677 = vrot.lane.b32.xlu0 %v529_v5, %s2459_s14 }
 0x133   : > { %671 = vrot.lane.b32.xlu1 %v507_v12, %s2459_s14  ;;  %v1639_v12 = vld [vmem:[%s2443_s1] ss:$8 sps:$4 sm:$0xff]  }
 0x135   : > { %v694_v14 = vpop.permute.xlu1 %693  ;;  %v712_v41 = vpop.permute.xlu0 %711 }
 0x136   : > { %667 = vrot.lane.b32.xlu0 %v1509_v54, %s2459_s14 }
 0x137   : > { %669 = vrot.lane.b32.xlu1 %v1510_v13, %s2459_s14 }
 0x139   : > { %v710_v44 = vpop.permute.xlu1 %709  ;;  %v692_v16 = vpop.permute.xlu0 %691 }
 0x13a   : > { %665 = vrot.lane.b32.xlu0 %v1508_v19, %s2459_s14  ;;  %v734_v21 = vsel %vm467_vm2, %v710_v44, %v712_v41  ;;  %v733_v22 = vsel %vm467_vm2, %v708_v9, %v710_v44  ;;  %v728_v42 = vsel %vm467_vm2, %v692_v16, %v694_v14  ;;  %v727_v46 = vsel %vm467_vm2, %v690_v11, %v692_v16  ;;  %v2131_v16 = vld [vmem:[%s2444_s2 + $0x8] sm:$0xff] }
 0x13b   : > { %715 = vrot.lane.b32.xlu1 %v652_v20, %s2459_s14  ;;  %759 = vmatprep.subr.bf16.mxu0 %v734_v21 }
 0x13c   : > { %760 = vmatpush1.bf16.msra.mxu0 %v733_v22 }
 0x13e   : > { %717 = vrot.lane.b32.xlu0 %v653_v23, %s2459_s14  ;;  %v2125_v23 = vld [vmem:[%s2444_s2] sm:$0xff] }
 0x13f   : > { %713 = vrot.lane.b32.xlu1 %v646_v60, %s2459_s14  ;;  %s2402_s14 = scalar_lea.sflag [#allocation4], %s323_s27 }
 0x184   : > { %v682_v26 = vpop.permute.xlu1 %681 }
 0x188   : > { %v696_v17 = vpop.permute.xlu1 %695 }
 0x18c   : > { %v688_v27 = vpop.permute.xlu0 %687  ;;  %v706_v28 = vpop.permute.xlu1 %705 }
 0x190   : > { %v702_v29 = vpop.permute.xlu0 %701  ;;  %v698_v31 = vpop.permute.xlu1 %697 }
 0x191   : > { %v729_v40 = vsel %vm467_vm2, %v696_v17, %v698_v31  ;;  %v834_v17 = vmul.f32 2.0, %v2125_v23 }
 0x194   : > { %v704_v30 = vpop.permute.xlu0 %703 }
 0x195   : > { %v732_v32 = vsel %vm467_vm2, %v704_v30, %v706_v28  ;;  %v731_v33 = vsel %vm467_vm2, %v702_v29, %v704_v30  ;;  %v857_v29 = vmul.f32 256.0, %v2131_v16 }
 0x196   : > { %761 = vmatprep.subr.bf16.mxu0 %v732_v32 }
 0x197   : > { %762 = vmatpush1.bf16.msra.mxu0 %v731_v33  ;;  %v866_v33 = vmul.f32 2.0, %v2131_v16 }
 0x198   : > { %v700_v34 = vpop.permute.xlu0 %699 }
 0x199   : > { %v674_v37 = vpop.permute.xlu1 %673  ;;  %v730_v39 = vsel %vm467_vm2, %v698_v31, %v700_v34 }
 0x19a   : > { %763 = vmatprep.subr.bf16.mxu0 %v730_v39 }
 0x19b   : > { %764 = vmatpush1.bf16.msra.mxu0 %v729_v40 }
 0x19c   : > { %v676_v43 = vpop.permute.xlu0 %675  ;;  %765 = vmatprep.subr.bf16.mxu0 %v728_v42 }
 0x19d   : > { %v686_v45 = vpop.permute.xlu1 %685  ;;  %v722_v59 = vsel %vm467_vm2, %v674_v37, %v676_v43 }
 0x19e   : > { %v726_v47 = vsel %vm467_vm2, %v686_v45, %v688_v27 }
 0x19f   : > { %766 = vmatpush1.bf16.msra.mxu0 %v727_v46 }
 0x1a0   : > { %v680_v49 = vpop.permute.xlu0 %679  ;;  %767 = vmatprep.subr.bf16.mxu0 %v726_v47 }
 0x1a1   : > { %v684_v50 = vpop.permute.xlu1 %683  ;;  %v724_v55 = vsel %vm467_vm2, %v680_v49, %v682_v26  ;;  %v824_v26 = vmul.f32 256.0, %v2125_v23 }
 0x1a2   : > { %v725_v51 = vsel %vm467_vm2, %v684_v50, %v686_v45 }
 0x1a3   : > { %768 = vmatpush1.bf16.msra.mxu0 %v725_v51  ;;  %v837_v32 = vmul.f32 %v824_v26, %v2125_v23 }
 0x1a4   : > { %v678_v56 = vpop.permute.xlu0 %677  ;;  %769 = vmatprep.subr.bf16.mxu0 %v724_v55 }
 0x1a5   : > { %v672_v57 = vpop.permute.xlu1 %671  ;;  %v723_v58 = vsel %vm467_vm2, %v678_v56, %v680_v49  ;;  %v869_v49 = vmul.f32 %v857_v29, %v2131_v16 }
 0x1a6   : > { %v721_v0 = vsel %vm467_vm2, %v672_v57, %v674_v37 }
 0x1a7   : > { %770 = vmatpush1.bf16.msra.mxu0 %v723_v58 }
 0x1a8   : > { %v668_v60 = vpop.permute.xlu0 %667  ;;  %771 = vmatprep.subr.bf16.mxu0 %v722_v59 }
 0x1a9   : > { %v670_v61 = vpop.permute.xlu1 %669 }
 0x1aa   : > { %v720_v1 = vsel %vm467_vm2, %v668_v60, %v670_v61 }
 0x1ab   : > { %772 = vmatpush1.bf16.msra.mxu0 %v721_v0 }
 0x1ac   : > { %v666_v2 = vpop.permute.xlu0 %665  ;;  %773 = vmatprep.subr.bf16.mxu0 %v720_v1 }
 0x1ad   : > { %v716_v3 = vpop.permute.xlu1 %715  ;;  %v719_v5 = vsel %vm467_vm2, %v666_v2, %v668_v60 }
 0x1af   : > { %774 = vmatpush1.bf16.msra.mxu0 %v719_v5 }
 0x1b0   : > { %v718_v7 = vpop.permute.xlu0 %717 }
 0x1b1   : > { %v714_v8 = vpop.permute.xlu1 %713  ;;  %v736_v9 = vsel %vm467_vm2, %v716_v3, %v718_v7 }
 0x1b2   : > { %789 = vmatprep.subr.bf16.mxu0 %v736_v9  ;;  %v735_v11 = vsel %vm467_vm2, %v714_v8, %v716_v3 }
 0x1b3   : > { %790 = vmatpush2.bf16.msra.mxu0 %v735_v11 }
 0x1b6   : > { %792 = vmatmul.mubr.bf16.vlgmr.msra.gmra.mxu0 %v1639_v12 }
 0x276   : > { %v2102_v10 = vpop.f32.mrf.mxu0 }
 0x277   : > { %v808_v14 = vmul.f32 %v2102_v10, %v2102_v10 }
 0x278   : > { %v2104_v18 = vpop.f32.mrf.mxu0 }
 0x279   : > { %v802_v53 = vadd.f32 %v2104_v18, %v2102_v10  ;;  %v809_v54 = vmul.f32 %v2104_v18, %v2104_v18 }
 0x27a   : > { %v2110_v13 = vpop.f32.mrf.mxu0 }
 0x27b   : > { %803 = vadd.xlane.f32.xlu0 %v802_v53  ;;  %v812_v44 = vadd.f32 %v809_v54, %v808_v14  ;;  %v810_v21 = vmul.f32 %v2110_v13, %v2110_v13 }
 0x27c   : > { %v2114_v41 = vpop.f32.mrf.mxu0 }
 0x27d   : > { %v811_v19 = vmul.f32 %v2114_v41, %v2114_v41  ;;  %v805_v20 = vadd.f32 %v2114_v41, %v2110_v13 }
 0x27f   : > { %813 = vadd.xlane.f32.xlu0 %v812_v44  ;;  %806 = vadd.xlane.f32.xlu1 %v805_v20  ;;  %v815_v22 = vadd.f32 %v811_v19, %v810_v21 }
 0x283   : > { %816 = vadd.xlane.f32.xlu0 %v815_v22 }
 0x304   : > { %v804_v27 = vpop.xlane.xlu0 %803 }
 0x305   : > { %v825_v28 = vadd.f32 %v824_v26, %v804_v27  ;;  %v835_v31 = vmul.f32 %v834_v17, %v804_v27 }
 0x307   : > { %v827_v30 = vsel %vm445_vm9, %v825_v28, 0.0 }
 0x308   : > { %v828_v34 = vrot.slane %v827_v30, 4  ;;  %v814_v37 = vpop.xlane.xlu0 %813  ;;  %v807_v39 = vpop.xlane.xlu1 %806 }
 0x309   : > { %v836_v40 = vadd.f32 %v835_v31, %v814_v37  ;;  %v858_v42 = vadd.f32 %v857_v29, %v807_v39  ;;  %v867_v47 = vmul.f32 %v866_v33, %v807_v39 }
 0x30a   : > { %v829_v43 = vadd.f32 %v828_v34, %v827_v30 }
 0x30b   : > { %v838_v45 = vadd.f32 %v837_v32, %v836_v40  ;;  %v859_v46 = vsel %vm445_vm9, %v858_v42, 0.0  ;;  %v820_v40 = vld [vmem:[%s2445_s3] sm:$0xff] }
 0x30c   : > { %v830_v50 = vrot.slane %v829_v43, 2  ;;  %v860_v51 = vrot.slane %v859_v46, 4  ;;  %v817_v55 = vpop.xlane.xlu0 %816 }
 0x30d   : > { %v839_v56 = vsel %vm445_vm9, %v838_v45, 0.0  ;;  %v868_v57 = vadd.f32 %v867_v47, %v817_v55  ;;  %v821_v47 = vld [vmem:[%s2445_s3 + $0x8] sm:$0xff] }
 0x30e   : > { %v831_v58 = vadd.f32 %v830_v50, %v829_v43  ;;  %v840_v59 = vrot.slane %v839_v56, 4  ;;  %v861_v60 = vadd.f32 %v860_v51, %v859_v46  ;;  %v822_v46 = vld [vmem:[%s2446_s4] sm:$0xff] }
 0x30f   : > { %v870_v61 = vadd.f32 %v869_v49, %v868_v57  ;;  %v2154_v57 = vld [vmem:[#allocation2 + $0x1c] sm:$0xf] }
 0x310   : > { %v832_v0 = vrot.slane %v831_v58, 1  ;;  %v841_v1 = vadd.f32 %v840_v59, %v839_v56  ;;  %v862_v2 = vrot.slane %v861_v60, 2  ;;  %v2152_v56 = vld [vmem:[#allocation2 + $0xc] sm:$0xf]  ;;  %v960_v59 = vsel %vm1902_vm10, %v2154_v57, 0 }
 0x311   : > { %v871_v3 = vsel %vm445_vm9, %v870_v61, 0.0  ;;  %v962_v35 = vsel %vm1885_vm7, %v2152_v56, 0 }
 0x312   : > { %v833_v5 = vadd.f32 %v832_v0, %v831_v58  ;;  %v842_v7 = vrot.slane %v841_v1, 2  ;;  %v863_v8 = vadd.f32 %v862_v2, %v861_v60  ;;  %v872_v9 = vrot.slane %v871_v3, 4  ;;  %v823_v60 = vld [vmem:[%s2446_s4 + $0x8] sm:$0xff] }
 0x313   : > { %v964_v2 = vsel %vm1885_vm7, %v2154_v57, 0  ;;  %vm2486_vm7 = vcmp.ne.s16.totalorder %v1934_v48, 0 }
 0x314   : > { %v843_v11 = vadd.f32 %v842_v7, %v841_v1  ;;  %v864_v12 = vrot.slane %v863_v8, 1  ;;  %v873_v53 = vadd.f32 %v872_v9, %v871_v3  ;;  %v846_v54 = vmul.f32 0.00048828125, %v833_v5 }
 0x315   : > { %v1558_v3 = vcombine.low %v962_v35, %v964_v2 }
 0x316   : > { %v844_v14 = vrot.slane %v843_v11, 1  ;;  %v865_v19 = vadd.f32 %v864_v12, %v863_v8  ;;  %v874_v44 = vrot.slane %v873_v53, 2  ;;  %v848_v22 = vmul.f32 %v846_v54, %v846_v54 }
 0x317   : > { %v854_v45 = vsub.f32 %v2125_v23, %v846_v54  ;;  %v958_v23 = vsel %vm1902_vm10, %v2152_v56, 0  ;;  %vm2489_vm10 = vmmov %vm2486_vm7 }
 0x318   : > { %v845_v20 = vadd.f32 %v844_v14, %v843_v11  ;;  %v875_v21 = vadd.f32 %v874_v44, %v873_v53  ;;  %v878_v17 = vmul.f32 0.00048828125, %v865_v19  ;;  %v1555_v0 = vcombine.low %v958_v23, %v960_v59 }
 0x31a   : > { %v847_v26 = vmul.f32 0.00048828125, %v845_v20  ;;  %v876_v27 = vrot.slane %v875_v21, 1  ;;  %v880_v31 = vmul.f32 %v878_v17, %v878_v17  ;;  %v886_v58 = vsub.f32 %v2131_v16, %v878_v17 }
 0x31b   : > { %v1561_v16 = vcombine.low %v2152_v56, %v2154_v57 }
 0x31c   : > { %v849_v28 = vsub.f32 %v847_v26, %v848_v22  ;;  %v877_v29 = vadd.f32 %v876_v27, %v875_v21 }
 0x31e   : > { %v850_v30 = vmax.f32 %v849_v28, 0.0  ;;  %v879_v32 = vmul.f32 0.00048828125, %v877_v29 }
 0x320   : > { %v851_v33 = vadd.f32 1e-05, %v850_v30  ;;  %v881_v34 = vsub.f32 %v879_v32, %v880_v31 }
 0x322   : > { %1649 = vrsqrt.f32 %v851_v33  ;;  %v882_v37 = vmax.f32 %v881_v34, 0.0 }
 0x324   : > { %v883_v39 = vadd.f32 1e-05, %v882_v37 }
 0x326   : > { %1651 = vrsqrt.f32 %v883_v39 }
 0x32f   : > { %v1650_v42 = vpop.eup %1649 }
 0x330   : > { %v853_v43 = vmul.f32 %v1650_v42, %v820_v40 }
 0x332   : > { %891 = vperm.xlu1 %1633, %v853_v43   ;;  %v855_v49 = vmul.f32 %v854_v45, %v853_v43 }
 0x333   : > { %v1652_v50 = vpop.eup %1651 }
 0x334   : > { %v856_v51 = vadd.f32 %v855_v49, %v822_v46  ;;  %v885_v55 = vmul.f32 %v1652_v50, %v821_v47 }
 0x336   : > { %905 = vperm.xlu1 %1633, %v856_v51   ;;  %896 = vperm.xlu0 %1634, %v885_v55   ;;  %v887_v61 = vmul.f32 %v886_v58, %v885_v55 }
 0x338   : > { %v888_v1 = vadd.f32 %v887_v61, %v823_v60 }
 0x33a   : > { %1075 = vrot.lane.b32.xlu0 %v1555_v0, %s1732_s22  ;;  %910 = vperm.xlu1 %1633, %v888_v1   ;;  %v966_v1 = vsel %vm1997_vm4, %v2152_v56, 0 }
 0x33e   : > { %1117 = vrot.lane.b32.xlu1 %v1561_v16, %s1729_s16  ;;  %v968_v16 = vsel %vm1997_vm4, %v2154_v57, 0 }
 0x33f   : > { %v1564_v48 = vcombine.low %v966_v1, %v968_v16 }
 0x342   : > { %1096 = vrot.lane.b32.xlu1 %v1558_v3, %s1731_s21 }
 0x3ad   : > { %v892_v5 = vpop.permute.xlu1 %891 }
 0x3ae   : > { %v899_v7 = vmul.f32 %v892_v5, %v2102_v10  ;;  %v900_v8 = vmul.f32 %v892_v5, %v2104_v18 }
 0x3b1   : > { %v897_v9 = vpop.permute.xlu0 %896  ;;  %v906_v11 = vpop.permute.xlu1 %905 }
 0x3b2   : > { %v913_v12 = vadd.f32 %v906_v11, %v899_v7  ;;  %v914_v53 = vadd.f32 %v906_v11, %v900_v8  ;;  %v901_v54 = vmul.f32 %v897_v9, %v2110_v13  ;;  %v902_v14 = vmul.f32 %v897_v9, %v2114_v41 }
 0x3b4   : > { %v917_v25 = vmax.f32 %v913_v12, 0.0  ;;  %v918_v19 = vmax.f32 %v914_v53, 0.0 }
 0x3b5   : > { %v911_v44 = vpop.permute.xlu1 %910  ;;  %v1076_v8 = vpop.permute.xlu0 %1075 }
 0x3b6   : > { %v1576_v20 = vpack.c.bf16 %v918_v19, %v917_v25  ;;  %v915_v21 = vadd.f32 %v911_v44, %v901_v54  ;;  %v916_v22 = vadd.f32 %v911_v44, %v902_v14 }
 0x3b8   : > { %933 = vst [vmem:[#allocation2 + $0x4] sm:$0xff] %v1576_v20  ;;  %v919_v26 = vmax.f32 %v915_v21, 0.0  ;;  %v920_v17 = vmax.f32 %v916_v22, 0.0  ;;  %v957_v13 = vsel %vm447_vm13, %v1576_v20, 0  ;;  %v961_v39 = vsel %vm458_vm8, %v1576_v20, 0 }
 0x3b9   : > { %v1118_v5 = vpop.permute.xlu1 %1117 }
 0x3ba   : > { %v1577_v10 = vpack.c.bf16 %v920_v17, %v919_v26  ;;  %v1659_v18 = vpack.c.bf16 %v919_v26, %v917_v25  ;;  %v1660_v27 = vpack.c.bf16 %v920_v17, %v918_v19 }
 0x3bc   : > { %934 = vst [vmem:[#allocation2 + $0x14] sm:$0xff] %v1577_v10  ;;  %v959_v28 = vsel %vm447_vm13, %v1577_v10, 0  ;;  %1113 = vrot.lane.b32.xlu1 %v1659_v18, %s1729_s16  ;;  %1055 = vrot.lane.b32.xlu0 %v1660_v27, %s1730_s17  ;;  %v963_v31 = vsel %vm458_vm8, %v1577_v10, 0  ;;  %vm2487_vm8 = vcmp.ne.s16.totalorder %v1981_v6, 0 }
 0x3bd   : > { %v1553_v41 = vcombine.low %v957_v13, %v959_v28  ;;  %v1556_v40 = vcombine.low %v961_v39, %v963_v31  ;;  %v1557_v51 = vcombine.high %v961_v39, %v963_v31  ;;  %v1554_v62 = vcombine.high %v957_v13, %v959_v28  ;;  %vm2490_vm13 = vmmov %vm2487_vm8  ;;  %v1097_v7 = vpop.permute.xlu1 %1096 }
 0x3be   : > { %v967_v23 = vsel %vm2487_vm8, %v1577_v10, 0  ;;  %v965_v61 = vsel %vm2490_vm13, %v1576_v20, 0 }
 0x3bf   : > { %v936_v29 = vld [vmem:[#allocation2 + $0x8] sm:$0xf]  ;;  %v935_v37 = vld [vmem:[#allocation2] sm:$0xff]  ;;  %v1562_v0 = vcombine.low %v965_v61, %v967_v23  ;;  %v1563_v57 = vcombine.high %v965_v61, %v967_v23 }
 0x3c0   : > { %1115 = vrot.lane.b32.xlu1 %v1660_v27, %s1729_s16  ;;  %1071 = vrot.lane.b32.xlu0 %v1553_v41, %s1732_s22  ;;  %v948_v33 = vsel %vm1943_vm15, %v936_v29, 0  ;;  %v2203_v43 = vsel %vm402_vm5, %v935_v37, 0  ;;  %v940_v24 = vsel %vm2048_vm14, %v936_v29, 0  ;;  %v943_v46 = vsel %vm419_vm1, %v935_v37, 0  ;;  %s2485_s16 = smov 126  }
 0x3c1   : > { %v947_v59 = vsel %vm2489_vm10, %v935_v37, 0  ;;  %v944_v6 = vsel %vm1906_vm11, %v936_v29, 0 }
 0x3c3   : > { %v938_v30 = vld [vmem:[#allocation2 + $0x18] sm:$0xf]  ;;  %v937_v32 = vld [vmem:[#allocation2 + $0x10] sm:$0xff] }
 0x3c4   : > { %v950_v34 = vsel %vm1943_vm15, %v938_v30, 0  ;;  %1053 = vrot.lane.b32.xlu1 %v1659_v18, %s1730_s17  ;;  %v945_v42 = vsel %vm419_vm1, %v937_v32, 0  ;;  %v2207_v52 = vsel %vm402_vm5, %v937_v32, 0  ;;  %v942_v45 = vsel %vm2048_vm14, %v938_v30, 0  ;;  %s2488_s17 = smov 127  }
 0x3c5   : > { %v1550_v38 = vcombine.low %v948_v33, %v950_v34  ;;  %v1540_v47 = vcombine.high %v2203_v43, %v2207_v52  ;;  %v1539_v49 = vcombine.low %v2203_v43, %v2207_v52  ;;  %v2219_v50 = vcombine.low %v940_v24, %v942_v45 }
 0x3c6   : > { %v1546_v63 = vcombine.high %v943_v46, %v945_v42  ;;  %v1545_v55 = vcombine.low %v943_v46, %v945_v42  ;;  %v1544_v4 = vcombine.low %v936_v29, %v938_v30  ;;  %v949_v58 = vsel %vm2486_vm7, %v937_v32, 0  ;;  %v1648_v46 = vld [vmem:[%s2447_s5 + $0x4] ss:$8 sps:$4 sm:$0xff]  }
 0x3c7   : > { %1041 = vrot.lane.b32.xlu0 %v1550_v38, %s1734_s24  ;;  %v1549_v60 = vcombine.high %v947_v59, %v949_v58  ;;  %v1548_v35 = vcombine.low %v947_v59, %v949_v58  ;;  %v946_v2 = vsel %vm1906_vm11, %v938_v30, 0  ;;  %v1543_v56 = vcombine.high %v935_v37, %v937_v32  ;;  %1567 = vmatprep.mubr.msk.bf16.mxu1 %vm755_vm3, %v1648_v46 }
 0x3c8   : > { %1092 = vrot.lane.b32.xlu1 %v1556_v40, %s1731_s21  ;;  %v1547_v3 = vcombine.low %v944_v6, %v946_v2  ;;  %v1542_v15 = vcombine.low %v935_v37, %v937_v32  ;;  %vm2493_vm11 = vcmask 777216   ;;  %vm2495_vm15 = vcmask 785408  }
 0x3c9   : > { %vm2494_vm14 = vmmov %vm2493_vm11  ;;  %vm2496_vm1 = vcmask 900096   ;;  %vm2500_vm7 = vcmask 916480  }
 0x3ca   : > { %vm2497_vm4 = vmmov %vm2495_vm15 }
 0x3cb   : > { %1018 = vrot.lane.b32.xlu0 %v1546_v63, %s2485_s16  ;;  %vm2498_vm5 = vmmov %vm2496_vm1 }
 0x3cc   : > { %1094 = vrot.lane.b32.xlu1 %v1557_v51, %s1731_s21  ;;  %s2491_s21 = smov 94   ;;  %vm2501_vm8 = vmmov %vm2500_vm7 }
 0x3cf   : > { %1016 = vrot.lane.b32.xlu0 %v1545_v55, %s2485_s16 }
 0x3d0   : > { %1073 = vrot.lane.b32.xlu1 %v1554_v62, %s1732_s22  ;;  %s2492_s22 = smov 17  }
 0x3d3   : > { %999 = vrot.lane.b32.xlu0 %v1544_v4, %s2488_s17 }
 0x3d4   : > { %1039 = vrot.lane.b32.xlu1 %v1549_v60, %s1734_s24 }
 0x3d7   : > { %1134 = vrot.lane.b32.xlu0 %v1562_v0, %s2491_s21 }
 0x3d8   : > { %1037 = vrot.lane.b32.xlu1 %v1548_v35, %s1734_s24 }
 0x3db   : > { %1138 = vrot.lane.b32.xlu0 %v1564_v48, %s2491_s21 }
 0x3dc   : > { %1020 = vrot.lane.b32.xlu1 %v1547_v3, %s2485_s16  ;;  %s325_s16 = scalar_lea.vmem [#allocation3], %s1503_s23 }
 0x3e0   : > { %997 = vrot.lane.b32.xlu1 %v1543_v56, %s2488_s17 }
 0x3e4   : > { %995 = vrot.lane.b32.xlu1 %v1542_v15, %s2488_s17  ;;  %s1437_s17 = sshll.u32 %s325_s16, 4  ;;  %s2393_s17 = int_to_ptr.vmem [resolvable:$true] %s1437_s17 }
 0x3e5   : > { %p1668_p0 = scmp.lt.s32.totalorder %s2393_s17, %s1666_s28 }
 0x3e8   : > { %1136 = vrot.lane.b32.xlu1 %v1563_v57, %s2491_s21  ;;  %s1578_s21 = sshll.u32 %s1810_s13, 9  ;;  %s1661_s13 = scalar_lea.vmem %s2393_s17, 512 }
 0x3e9   : > { %s2398_s24 = scalar_lea.hbm %s2451_s9, %s1578_s21  ;;  %p1662_p11 = scmp.ne.s32.totalorder %s2393_s17, %s1661_s13 }
 0x3ea   : > { %p1669_p1 = scmp.lt.s32.totalorder %s1667_s29, %s1661_s13 }
 0x3eb   : > { %p1663_p12 = pnand %p1662_p11, %p1827_p5 }
 0x3ec   : > { %p1670_p2 = por %p1669_p1, %p1668_p0 }
 0x3ed   : > { %p1664_p13 = pneg %p1663_p12 }
 0x3ef   : > { %p1671_p3 = pnand %p1670_p2, %p1664_p13 }
 0x42e   : > { %v1114_v9 = vpop.permute.xlu1 %1113  ;;  %v1056_v36 = vpop.permute.xlu0 %1055 }
 0x42f   : > { %1195 = vrot.lane.b32.xlu1 %v1114_v9, %s2492_s22 }
 0x432   : > { %v1116_v11 = vpop.permute.xlu1 %1115  ;;  %v1072_v54 = vpop.permute.xlu0 %1071 }
 0x433   : > { %1181 = vrot.lane.b32.xlu1 %v1056_v36, %s2492_s22  ;;  %v1119_v53 = vsel %vm2493_vm11, %v1114_v9, %v1116_v11  ;;  %v1120_v25 = vsel %vm2494_vm14, %v1116_v11, %v1118_v5 }
 0x436   : > { %v1054_v12 = vpop.permute.xlu1 %1053 }
 0x437   : > { %1197 = vrot.lane.b32.xlu1 %v1119_v53, %s2492_s22  ;;  %1177 = vrot.lane.b32.xlu0 %v1054_v12, %s2492_s22  ;;  %v1057_v21 = vsel %vm400_vm6, %v1054_v12, %v1056_v36  ;;  %vm2499_vm6 = vcmask 1039360  }
 0x439   : > { %v1042_v44 = vpop.permute.xlu0 %1041 }
 0x43a   : > { %v1093_v14 = vpop.permute.xlu1 %1092 }
 0x43b   : > { %1183 = vrot.lane.b32.xlu1 %v1072_v54, %s2492_s22  ;;  %1199 = vrot.lane.b32.xlu0 %v1120_v25, %s2492_s22 }
 0x43d   : > { %v1019_v22 = vpop.permute.xlu0 %1018 }
 0x43e   : > { %v1095_v19 = vpop.permute.xlu1 %1094 }
 0x43f   : > { %1189 = vrot.lane.b32.xlu0 %v1093_v14, %s2492_s22  ;;  %v1098_v10 = vsel %vm2495_vm15, %v1093_v14, %v1095_v19  ;;  %v1099_v13 = vsel %vm2497_vm4, %v1095_v19, %v1097_v7 }
 0x441   : > { %v1017_v18 = vpop.permute.xlu0 %1016 }
 0x442   : > { %v1074_v20 = vpop.permute.xlu1 %1073  ;;  %v1022_v32 = vsel %vm528_vm0, %v1017_v18, %v1019_v22 }
 0x443   : > { %1179 = vrot.lane.b32.xlu0 %v1057_v21, %s2492_s22  ;;  %v1078_v28 = vsel %vm2496_vm1, %v1074_v20, %v1076_v8  ;;  %v1077_v29 = vsel %vm2498_vm5, %v1072_v54, %v1074_v20 }
 0x445   : > { %v1000_v41 = vpop.permute.xlu0 %999 }
 0x446   : > { %v1040_v26 = vpop.permute.xlu1 %1039 }
 0x447   : > { %1175 = vrot.lane.b32.xlu0 %v1042_v44, %s2492_s22  ;;  %v1044_v37 = vsel %vm2500_vm7, %v1040_v26, %v1042_v44 }
 0x449   : > { %v1135_v38 = vpop.permute.xlu0 %1134 }
 0x44a   : > { %v1038_v17 = vpop.permute.xlu1 %1037 }
 0x44b   : > { %1191 = vrot.lane.b32.xlu0 %v1098_v10, %s2492_s22  ;;  %v1043_v39 = vsel %vm2501_vm8, %v1038_v17, %v1040_v26 }
 0x44d   : > { %v1139_v42 = vpop.permute.xlu0 %1138 }
 0x44e   : > { %v1021_v27 = vpop.permute.xlu1 %1020 }
 0x44f   : > { %1187 = vrot.lane.b32.xlu0 %v1078_v28, %s2492_s22  ;;  %1169 = vrot.lane.b32.xlu1 %v1021_v27, %s2492_s22  ;;  %v1023_v30 = vsel %vm528_vm0, %v1019_v22, %v1021_v27  ;;  %vm2502_vm0 = vmmov %vm2499_vm6  ;;  %v1646_v27 = vld [vmem:[%s2447_s5] ss:$8 sps:$4 sm:$0xff]  }
 0x452   : > { %v998_v31 = vpop.permute.xlu1 %997 }
 0x453   : > { %1163 = vrot.lane.b32.xlu0 %v1000_v41, %s2492_s22  ;;  %1193 = vrot.lane.b32.xlu1 %v1099_v13, %s2492_s22  ;;  %v1002_v33 = vsel %vm2499_vm6, %v998_v31, %v1000_v41 }
 0x456   : > { %v996_v34 = vpop.permute.xlu1 %995 }
 0x457   : > { %1167 = vrot.lane.b32.xlu0 %v1023_v30, %s2492_s22  ;;  %1185 = vrot.lane.b32.xlu1 %v1077_v29, %s2492_s22  ;;  %v1001_v24 = vsel %vm2502_vm0, %v996_v34, %v998_v31 }
 0x45a   : > { %v1137_v40 = vpop.permute.xlu1 %1136 }
 0x45b   : > { %1165 = vrot.lane.b32.xlu0 %v1022_v32, %s2492_s22  ;;  %1161 = vrot.lane.b32.xlu1 %v1002_v33, %s2492_s22  ;;  %v1141_v45 = vsel %vm651_vm12, %v1137_v40, %v1139_v42  ;;  %v1140_v43 = vsel %vm651_vm12, %v1135_v38, %v1137_v40  ;;  %v2350_v40 = vld [vmem:[%s2448_s6] sm:$0xff] }
 0x45c   : > { %v1311_v42 = vmul.f32 256.0, %v2350_v40 }
 0x45f   : > { %1155 = vrot.lane.b32.xlu0 %v1540_v47, %s2492_s22  ;;  %1173 = vrot.lane.b32.xlu1 %v1044_v37, %s2492_s22 }
 0x463   : > { %1153 = vrot.lane.b32.xlu0 %v1539_v49, %s2492_s22  ;;  %1171 = vrot.lane.b32.xlu1 %v1043_v39, %s2492_s22 }
 0x467   : > { %1159 = vrot.lane.b32.xlu1 %v1001_v24, %s2492_s22  ;;  %1205 = vrot.lane.b32.xlu0 %v1141_v45, %s2492_s22  ;;  %v2356_v24 = vld [vmem:[%s2448_s6 + $0x8] sm:$0xff]  ;;  %v1320_v45 = vmul.f32 2.0, %v2350_v40 }
 0x46b   : > { %1157 = vrot.lane.b32.xlu1 %v2219_v50, %s2492_s22 }
 0x46f   : > { %1203 = vrot.lane.b32.xlu1 %v1140_v43, %s2492_s22 }
 0x473   : > { %1201 = vrot.lane.b32.xlu1 %v1135_v38, %s2492_s22 }
 0x4a1   : > { %v1196_v52 = vpop.permute.xlu1 %1195 }
 0x4a5   : > { %v1182_v47 = vpop.permute.xlu1 %1181 }
 0x4a9   : > { %v1178_v49 = vpop.permute.xlu0 %1177  ;;  %v1198_v63 = vpop.permute.xlu1 %1197 }
 0x4aa   : > { %v1221_v62 = vsel %vm467_vm2, %v1196_v52, %v1198_v63  ;;  %v1343_v52 = vmul.f32 256.0, %v2356_v24 }
 0x4ad   : > { %v1200_v51 = vpop.permute.xlu0 %1199  ;;  %v1184_v23 = vpop.permute.xlu1 %1183 }
 0x4ae   : > { %v1222_v55 = vsel %vm467_vm2, %v1198_v63, %v1200_v51  ;;  %v1323_v63 = vmul.f32 %v1311_v42, %v2350_v40  ;;  %v1352_v51 = vmul.f32 2.0, %v2356_v24 }
 0x4af   : > { %1246 = vmatprep.subr.bf16.mxu1 %v1222_v55 }
 0x4b0   : > { %1247 = vmatpush1.bf16.msra.mxu1 %v1221_v62 }
 0x4b1   : > { %v1190_v4 = vpop.permute.xlu0 %1189 }
 0x4b5   : > { %v1180_v58 = vpop.permute.xlu0 %1179 }
 0x4b6   : > { %v1216_v56 = vsel %vm467_vm2, %v1180_v58, %v1182_v47  ;;  %v1215_v5 = vsel %vm467_vm2, %v1178_v49, %v1180_v58 }
 0x4b9   : > { %v1176_v50 = vpop.permute.xlu0 %1175 }
 0x4bd   : > { %v1192_v59 = vpop.permute.xlu0 %1191 }
 0x4be   : > { %v1219_v35 = vsel %vm467_vm2, %v1190_v4, %v1192_v59 }
 0x4c1   : > { %v1188_v60 = vpop.permute.xlu0 %1187  ;;  %v1170_v61 = vpop.permute.xlu1 %1169 }
 0x4c5   : > { %v1164_v0 = vpop.permute.xlu0 %1163  ;;  %v1194_v1 = vpop.permute.xlu1 %1193 }
 0x4c6   : > { %v1220_v16 = vsel %vm467_vm2, %v1192_v59, %v1194_v1 }
 0x4c7   : > { %1248 = vmatprep.subr.bf16.mxu1 %v1220_v16 }
 0x4c8   : > { %1249 = vmatpush1.bf16.msra.mxu1 %v1219_v35 }
 0x4c9   : > { %v1168_v48 = vpop.permute.xlu0 %1167  ;;  %v1186_v2 = vpop.permute.xlu1 %1185 }
 0x4ca   : > { %v1218_v6 = vsel %vm467_vm2, %v1186_v2, %v1188_v60  ;;  %v1217_v3 = vsel %vm467_vm2, %v1184_v23, %v1186_v2  ;;  %v1212_v12 = vsel %vm467_vm2, %v1168_v48, %v1170_v61 }
 0x4cb   : > { %1250 = vmatprep.subr.bf16.mxu1 %v1218_v6 }
 0x4cc   : > { %1251 = vmatpush1.bf16.msra.mxu1 %v1217_v3 }
 0x4cd   : > { %1252 = vmatprep.subr.bf16.mxu1 %v1216_v56  ;;  %v1162_v15 = vpop.permute.xlu1 %1161  ;;  %v1166_v57 = vpop.permute.xlu0 %1165 }
 0x4ce   : > { %v1211_v54 = vsel %vm467_vm2, %v1166_v57, %v1168_v48  ;;  %v1210_v25 = vsel %vm467_vm2, %v1162_v15, %v1164_v0  ;;  %v1355_v0 = vmul.f32 %v1343_v52, %v2356_v24 }
 0x4d0   : > { %1253 = vmatpush1.bf16.msra.mxu1 %v1215_v5 }
 0x4d1   : > { %v1174_v7 = vpop.permute.xlu1 %1173  ;;  %v1156_v9 = vpop.permute.xlu0 %1155 }
 0x4d2   : > { %v1214_v8 = vsel %vm467_vm2, %v1174_v7, %v1176_v50 }
 0x4d3   : > { %1254 = vmatprep.subr.bf16.mxu1 %v1214_v8 }
 0x4d5   : > { %v1172_v36 = vpop.permute.xlu1 %1171  ;;  %v1154_v14 = vpop.permute.xlu0 %1153 }
 0x4d6   : > { %v1213_v11 = vsel %vm467_vm2, %v1172_v36, %v1174_v7  ;;  %v1207_v26 = vsel %vm467_vm2, %v1154_v14, %v1156_v9 }
 0x4d7   : > { %1255 = vmatpush1.bf16.msra.mxu1 %v1213_v11 }
 0x4d8   : > { %1256 = vmatprep.subr.bf16.mxu1 %v1212_v12 }
 0x4d9   : > { %v1160_v53 = vpop.permute.xlu1 %1159  ;;  %v1206_v21 = vpop.permute.xlu0 %1205 }
 0x4da   : > { %v1209_v44 = vsel %vm467_vm2, %v1160_v53, %v1162_v15 }
 0x4db   : > { %1257 = vmatpush1.bf16.msra.mxu1 %v1211_v54 }
 0x4dc   : > { %1258 = vmatprep.subr.bf16.mxu1 %v1210_v25 }
 0x4dd   : > { %v1158_v19 = vpop.permute.xlu1 %1157 }
 0x4de   : > { %v1208_v20 = vsel %vm467_vm2, %v1156_v9, %v1158_v19 }
 0x4df   : > { %1259 = vmatpush1.bf16.msra.mxu1 %v1209_v44 }
 0x4e0   : > { %1260 = vmatprep.subr.bf16.mxu1 %v1208_v20 }
 0x4e1   : > { %v1204_v22 = vpop.permute.xlu1 %1203 }
 0x4e2   : > { %v1224_v17 = vsel %vm467_vm2, %v1204_v22, %v1206_v21 }
 0x4e3   : > { %1261 = vmatpush1.bf16.msra.mxu1 %v1207_v26 }
 0x4e4   : > { %1276 = vmatprep.subr.bf16.mxu1 %v1224_v17 }
 0x4e5   : > { %v1202_v10 = vpop.permute.xlu1 %1201 }
 0x4e6   : > { %v1223_v18 = vsel %vm467_vm2, %v1202_v10, %v1204_v22 }
 0x4e7   : > { %1277 = vmatpush2.bf16.msra.mxu1 %v1223_v18 }
 0x4ea   : > { %1279 = vmatmul.mubr.bf16.vlgmr.msra.gmra.mxu1 %v1646_v27 }
 0x5aa   : > { %v2327_v28 = vpop.f32.mrf.mxu1 }
 0x5ab   : > { %v1295_v31 = vmul.f32 %v2327_v28, %v2327_v28 }
 0x5ac   : > { %v2329_v13 = vpop.f32.mrf.mxu1 }
 0x5ad   : > { %v1289_v41 = vadd.f32 %v2329_v13, %v2327_v28  ;;  %v1296_v29 = vmul.f32 %v2329_v13, %v2329_v13 }
 0x5ae   : > { %v2335_v30 = vpop.f32.mrf.mxu1 }
 0x5af   : > { %1290 = vadd.xlane.f32.xlu0 %v1289_v41  ;;  %v1299_v37 = vadd.f32 %v1296_v29, %v1295_v31  ;;  %v1297_v38 = vmul.f32 %v2335_v30, %v2335_v30 }
 0x5b0   : > { %v2339_v32 = vpop.f32.mrf.mxu1 }
 0x5b1   : > { %v1292_v33 = vadd.f32 %v2339_v32, %v2335_v30  ;;  %v1298_v34 = vmul.f32 %v2339_v32, %v2339_v32 }
 0x5b3   : > { %1300 = vadd.xlane.f32.xlu0 %v1299_v37  ;;  %1293 = vadd.xlane.f32.xlu1 %v1292_v33  ;;  %v1302_v39 = vadd.f32 %v1298_v34, %v1297_v38 }
 0x5b7   : > { %1303 = vadd.xlane.f32.xlu0 %v1302_v39 }
 0x638   : > { %v1291_v46 = vpop.xlane.xlu0 %1290 }
 0x639   : > { %v1312_v43 = vadd.f32 %v1311_v42, %v1291_v46  ;;  %v1321_v49 = vmul.f32 %v1320_v45, %v1291_v46  ;;  %v1307_v42 = vld [vmem:[%s2449_s7] sm:$0xff] }
 0x63b   : > { %v1313_v47 = vsel %vm445_vm9, %v1312_v43, 0.0 }
 0x63c   : > { %v1314_v55 = vrot.slane %v1313_v47, 4  ;;  %v1301_v62 = vpop.xlane.xlu0 %1300  ;;  %v1294_v4 = vpop.xlane.xlu1 %1293 }
 0x63d   : > { %v1322_v58 = vadd.f32 %v1321_v49, %v1301_v62  ;;  %v1344_v50 = vadd.f32 %v1343_v52, %v1294_v4  ;;  %v1353_v61 = vmul.f32 %v1352_v51, %v1294_v4  ;;  %v1309_v52 = vld [vmem:[%s2450_s8] sm:$0xff]  ;;  %v1308_v49 = vld [vmem:[%s2449_s7 + $0x8] sm:$0xff] }
 0x63e   : > { %v1315_v23 = vadd.f32 %v1314_v55, %v1313_v47 }
 0x63f   : > { %v1324_v59 = vadd.f32 %v1323_v63, %v1322_v58  ;;  %v1345_v60 = vsel %vm445_vm9, %v1344_v50, 0.0 }
 0x640   : > { %v1316_v1 = vrot.slane %v1315_v23, 2  ;;  %v1346_v16 = vrot.slane %v1345_v60, 4  ;;  %v1304_v35 = vpop.xlane.xlu0 %1303 }
 0x641   : > { %v1325_v48 = vsel %vm445_vm9, %v1324_v59, 0.0  ;;  %v1354_v2 = vadd.f32 %v1353_v61, %v1304_v35 }
 0x642   : > { %v1317_v6 = vadd.f32 %v1316_v1, %v1315_v23  ;;  %v1326_v3 = vrot.slane %v1325_v48, 4  ;;  %v1347_v56 = vadd.f32 %v1346_v16, %v1345_v60  ;;  %v1407_v1 = vld [vmem:[%s1850_s25] sm:$0xff]  ;;  %v1408_v16 = vld [vmem:[%s1850_s25 + $0x8] sm:$0xff] }
 0x643   : > { %v1356_v15 = vadd.f32 %v1355_v0, %v1354_v2 }
 0x644   : > { %v1318_v57 = vrot.slane %v1317_v6, 1  ;;  %v1327_v5 = vadd.f32 %v1326_v3, %v1325_v48  ;;  %v1348_v7 = vrot.slane %v1347_v56, 2 }
 0x645   : > { %v1357_v8 = vsel %vm445_vm9, %v1356_v15, 0.0 }
 0x646   : > { %v1319_v9 = vadd.f32 %v1318_v57, %v1317_v6  ;;  %v1328_v36 = vrot.slane %v1327_v5, 2  ;;  %v1349_v11 = vadd.f32 %v1348_v7, %v1347_v56  ;;  %v1358_v12 = vrot.slane %v1357_v8, 4  ;;  %v1409_v7 = vld [vmem:[%s1850_s25 + $0x10] sm:$0xff] }
 0x648   : > { %v1329_v53 = vadd.f32 %v1328_v36, %v1327_v5  ;;  %v1350_v54 = vrot.slane %v1349_v11, 1  ;;  %v1359_v14 = vadd.f32 %v1358_v12, %v1357_v8  ;;  %v1332_v25 = vmul.f32 0.00048828125, %v1319_v9  ;;  %v1410_v8 = vld [vmem:[%s1850_s25 + $0x18] sm:$0xff] }
 0x64a   : > { %v1330_v19 = vrot.slane %v1329_v53, 1  ;;  %v1351_v44 = vadd.f32 %v1350_v54, %v1349_v11  ;;  %v1360_v20 = vrot.slane %v1359_v14, 2  ;;  %v1334_v26 = vmul.f32 %v1332_v25, %v1332_v25 }
 0x64b   : > { %v1340_v46 = vsub.f32 %v2350_v40, %v1332_v25  ;;  %v1310_v40 = vld [vmem:[%s2450_s8 + $0x8] sm:$0xff] }
 0x64c   : > { %v1331_v21 = vadd.f32 %v1330_v19, %v1329_v53  ;;  %v1361_v22 = vadd.f32 %v1360_v20, %v1359_v14  ;;  %v1364_v10 = vmul.f32 0.00048828125, %v1351_v44 }
 0x64e   : > { %v1333_v17 = vmul.f32 0.00048828125, %v1331_v21  ;;  %v1362_v18 = vrot.slane %v1361_v22, 1  ;;  %v1366_v31 = vmul.f32 %v1364_v10, %v1364_v10  ;;  %v1372_v55 = vsub.f32 %v2356_v24, %v1364_v10 }
 0x650   : > { %v1335_v27 = vsub.f32 %v1333_v17, %v1334_v26  ;;  %v1363_v41 = vadd.f32 %v1362_v18, %v1361_v22 }
 0x652   : > { %v1336_v29 = vmax.f32 %v1335_v27, 0.0  ;;  %v1365_v33 = vmul.f32 0.00048828125, %v1363_v41 }
 0x654   : > { %v1337_v34 = vadd.f32 1e-05, %v1336_v29  ;;  %v1367_v37 = vsub.f32 %v1365_v33, %v1366_v31 }
 0x656   : > { %1653 = vrsqrt.f32 %v1337_v34  ;;  %v1368_v38 = vmax.f32 %v1367_v37, 0.0 }
 0x658   : > { %v1369_v39 = vadd.f32 1e-05, %v1368_v38 }
 0x65a   : > { %1655 = vrsqrt.f32 %v1369_v39 }
 0x663   : > { %v1654_v45 = vpop.eup %1653 }
 0x664   : > { %v1339_v43 = vmul.f32 %v1654_v45, %v1307_v42 }
 0x666   : > { %1377 = vperm.xlu1 %1633, %v1339_v43   ;;  %v1341_v47 = vmul.f32 %v1340_v46, %v1339_v43 }
 0x667   : > { %v1656_v63 = vpop.eup %1655 }
 0x668   : > { %v1342_v51 = vadd.f32 %v1341_v47, %v1309_v52  ;;  %v1371_v62 = vmul.f32 %v1656_v63, %v1308_v49 }
 0x66a   : > { %1391 = vperm.xlu1 %1633, %v1342_v51   ;;  %1382 = vperm.xlu0 %1634, %v1371_v62   ;;  %v1373_v4 = vmul.f32 %v1372_v55, %v1371_v62 }
 0x66c   : > { %v1374_v58 = vadd.f32 %v1373_v4, %v1310_v40 }
 0x66e   : > { %1396 = vperm.xlu1 %1633, %v1374_v58  }
 0x6e1   : > { %v1378_v50 = vpop.permute.xlu1 %1377 }
 0x6e2   : > { %v1385_v23 = vmul.f32 %v1378_v50, %v2327_v28  ;;  %v1386_v59 = vmul.f32 %v1378_v50, %v2329_v13 }
 0x6e5   : > { %v1392_v60 = vpop.permute.xlu1 %1391  ;;  %v1383_v24 = vpop.permute.xlu0 %1382 }
 0x6e6   : > { %v1399_v61 = vadd.f32 %v1392_v60, %v1385_v23  ;;  %v1400_v0 = vadd.f32 %v1392_v60, %v1386_v59  ;;  %v1387_v2 = vmul.f32 %v1383_v24, %v2335_v30  ;;  %v1388_v6 = vmul.f32 %v1383_v24, %v2339_v32 }
 0x6e8   : > { %v1403_v35 = vmax.f32 %v1399_v61, 0.0  ;;  %v1404_v48 = vmax.f32 %v1400_v0, 0.0 }
 0x6e9   : > { %v1397_v3 = vpop.permute.xlu1 %1396 }
 0x6ea   : > { %v1411_v28 = vadd.f32 %v1407_v1, %v1403_v35  ;;  %v1412_v13 = vadd.f32 %v1408_v16, %v1404_v48  ;;  %v1401_v56 = vadd.f32 %v1397_v3, %v1387_v2  ;;  %v1402_v15 = vadd.f32 %v1397_v3, %v1388_v6 }
 0x6ec   : > { %v1415_v57 = vmax.f32 %v1411_v28, 0.0  ;;  %v1416_v5 = vmax.f32 %v1412_v13, 0.0  ;;  %v1405_v9 = vmax.f32 %v1401_v56, 0.0  ;;  %v1406_v36 = vmax.f32 %v1402_v15, 0.0 }
 0x6ee   : > { %1419 = vst [vmem:[%s325_s16] sm:$0xff] %v1415_v57  ;;  %1420 = vst [vmem:[%s325_s16 + $0x8] sm:$0xff] %v1416_v5  ;;  %v1413_v30 = vadd.f32 %v1409_v7, %v1405_v9  ;;  %v1414_v32 = vadd.f32 %v1410_v8, %v1406_v36 }
 0x6f0   : > { %v1417_v11 = vmax.f32 %v1413_v30, 0.0  ;;  %v1418_v12 = vmax.f32 %v1414_v32, 0.0 }
 0x6f2   : > { %1421 = vst [vmem:[%s325_s16 + $0x10] sm:$0xff] %v1417_v11  ;;  %1422 = vst [vmem:[%s325_s16 + $0x18] sm:$0xff] %v1418_v12 }
 0x6f3   : > { %1674 = shalt.err (!%p1671_p3)
}
 0x6f4   : > { %s1675_s27 = scalar_lea.hbm %s2398_s24, 512  ;;  %s1679_s21 = scalar_lea.hbm %s2451_s9, 1024 }
 0x6f5   : > { %p1676_p4 = scmp.ne.s32.totalorder %s2398_s24, %s1675_s27  ;;  %p1680_p9 = scmp.lt.s32.totalorder %s2398_s24, %s2451_s9 }
 0x6f6   : > { %p1681_p10 = scmp.lt.s32.totalorder %s1679_s21, %s1675_s27 }
 0x6f7   : > { %p1677_p7 = pnand %p1676_p4, %p1827_p5 }
 0x6f8   : > { %p1682_p11 = por %p1681_p10, %p1680_p9 }
 0x6f9   : > { %p1678_p8 = pneg %p1677_p7 }
 0x6fb   : > { %p1683_p12 = pnand %p1682_p11, %p1678_p8 }
 0x6fd   : > { %1686 = shalt.err (!%p1683_p12)
}
 0x6fe   : > { %s1737_s13 = smov 256   ;;  %s1738_s26 = smov 16  }
 0x6ff   : > { %1579 = dma.vmem_to_hbm [thread:$0]  (%p1827_p5), %s2393_s17, 512, %s2398_s24, %s2402_s14, %s1737_s13, %s1737_s13, %s1738_s26  }
 0x700 PF: > { %p1585_p13 = scmp.ge.s32.totalorder %s1721_s12, 2  ;;  %s1452_s28 = sand.u32 1, %s1709_s30  }
 0x701   : > { %s1453_s29 = scalar_lea.sflag [#allocation4], %s1452_s28 }
 0x702   : > { %p1582_p0 = pnand %p1585_p13, %p1831_p6 }
 0x704   : > { %p1583_p1 = pneg %p1582_p0 }
 0x706   : > { %1704 = dma.done.wait (%p1583_p1), %s1453_s29, 512  }
 0x707   : > { %1706 = vsyncadd (%p1583_p1), %s1453_s29, 4294966784  ;;  %p19_p2 = scmp.ge.s32.totalorder %s1814_s15, 4   ;;  %s2503_s30 = smov %s1713_s10 }
 0x708   : > { %s2504_s10 = smov %s1717_s11  ;;  %s2505_s11 = smov %s1825_s18 }
 0x709   : > { %s2506_s12 = smov %s1814_s15  ;;  %21 = sbr.rel (!%p19_p2) target bundleno = 3 (0x3), region = 91 }
 0x70e   :  { %1458 = vsyncpa [#allocation4], 1 }
 0x70f   :  { %1460 = vsyncpa [#allocation4 + $0x1], 1 }

</bundles_post_ra>
